<compile_context>
chip_gen: v7x
topology: tpu7x:2x2x1
jax: 0.10.0
libtpu: 0.0.40
codegen_flags: <defaults>
</compile_context>

<pallas_src>
import jax
import jax.numpy as jnp
from jax.experimental import pallas as pl
from jax.experimental.pallas import tpu as pltpu

OUT_CLASSES = 10
OUT_PAD = 128     # lane-dense padded classifier width
ROW_ALIGN = 16    # batch-tile alignment (bf16 output sublane tile)


def _round_up(a, b):
    return ((a + b - 1) // b) * b


def mlp_kernel(x_ref,
               w1_ref, b1_ref,
               w2_ref, b2_ref,
               w3_ref, b3_ref,
               w4_ref, b4_ref,
               w5_ref, b5_ref,
               out_ref):
    bf16 = jnp.bfloat16
    # Input arrives f32 straight from HBM (no wrapper-side cast pass); cast to bf16 on
    # the VPU so every GEMM runs bf16 x bf16 -> f32 accumulation on the MXU.
    x = x_ref[...].astype(bf16)
    # Linear(784,512) + ReLU   (f32 accumulation, f32 bias)
    h = jnp.dot(x, w1_ref[...], preferred_element_type=jnp.float32) + b1_ref[...]
    h = jnp.maximum(h, 0.0)
    # Linear(512,256) + ReLU
    h = jnp.dot(h.astype(bf16), w2_ref[...], preferred_element_type=jnp.float32) + b2_ref[...]
    h = jnp.maximum(h, 0.0)
    # Linear(256,128) + ReLU
    h = jnp.dot(h.astype(bf16), w3_ref[...], preferred_element_type=jnp.float32) + b3_ref[...]
    h = jnp.maximum(h, 0.0)
    # Linear(128,64) + ReLU
    h = jnp.dot(h.astype(bf16), w4_ref[...], preferred_element_type=jnp.float32) + b4_ref[...]
    h = jnp.maximum(h, 0.0)
    # Linear(64,10) padded to 128 lanes; pad columns carry bias -1e30 so softmax -> 0 there.
    logits = jnp.dot(h.astype(bf16), w5_ref[...], preferred_element_type=jnp.float32) + b5_ref[...]
    # Softmax over the (padded) last dim == torch.nn.Softmax(dim=1) on 2D input; f32 math,
    # EUP approx reciprocal for the denominator.
    m = jnp.max(logits, axis=-1, keepdims=True)
    e = jnp.exp(logits - m)
    probs = e * pl.reciprocal(jnp.sum(e, axis=-1, keepdims=True), approx=True)
    out_ref[...] = probs.astype(out_ref.dtype)   # bf16 writeback, lane-dense 128 wide


def mlp_forward(x_nchw, params, tb=1024):
    n = x_nchw.shape[0]
    x2d = x_nchw.reshape(n, -1)          # Flatten(): free reshape, stays f32 in HBM
    d_in = x2d.shape[1]

    (w1, b1), (w2, b2), (w3, b3), (w4, b4), (w5, b5) = params
    # Pad classifier to a lane-dense width; pad logits forced to -1e30 via the bias.
    w5p = jnp.zeros((w5.shape[0], OUT_PAD), jnp.float32).at[:, :OUT_CLASSES].set(w5)
    b5p = jnp.full((1, OUT_PAD), -1e30, jnp.float32).at[:, :OUT_CLASSES].set(b5)
    ws = [w.astype(jnp.bfloat16) for w in (w1, w2, w3, w4, w5p)]   # bf16 weights (~1.1 MiB)
    bs = [b1, b2, b3, b4, b5p]                                     # biases stay f32

    # Batch tile: as large as possible (amortizes per-step overhead / layer MXU drain),
    # multiple of 16 sublanes, but capped so the grid has >=2 steps whenever the batch
    # allows -> both v7x TensorCores get work under dimension_semantics=("parallel",).
    tb = max(ROW_ALIGN, min(tb, _round_up((n + 1) // 2, ROW_ALIGN)))
    n_pad = _round_up(n, tb)
    if n_pad != n:                        # pad only a ragged tail; zero-copy otherwise
        x2d = jnp.pad(x2d, ((0, n_pad - n), (0, 0)))

    args = [x2d]
    for w, b in zip(ws, bs):
        args += [w, b]

    # Weights/biases: constant index map + single buffer (no point double-buffering
    # operands that never change across grid steps).
    def resident(shape):
        return pl.BlockSpec(shape, lambda i: (0,) * len(shape),
                            pipeline_mode=pl.Buffered(1))

    in_specs = [pl.BlockSpec((tb, d_in), lambda i: (i, 0))]      # batch-tiled f32 input
    in_specs += [resident(a.shape) for a in args[1:]]            # VMEM-resident params

    out = pl.pallas_call(
        mlp_kernel,
        out_shape=jax.ShapeDtypeStruct((n_pad, OUT_PAD), jnp.bfloat16),
        grid=(n_pad // tb,),
        in_specs=in_specs,
        out_specs=pl.BlockSpec((tb, OUT_PAD), lambda i: (i, 0)),
        compiler_params=pltpu.CompilerParams(
            dimension_semantics=("parallel",),   # shard batch axis across TCs (v7x)
            vmem_limit_bytes=32 * 1024 * 1024,   # tb=1024 w/ f32 input fits on v5e too
        ),
    )(*args)
    return out[:n, :OUT_CLASSES].astype(jnp.float32)


def init_params(key):
    """Deterministic init matching torch.nn.Linear defaults; weights stored (in, out)."""
    dims = [784, 512, 256, 128, 64, 10]
    params = []
    for i in range(len(dims) - 1):
        k_w, k_b, key = jax.random.split(key, 3)
        fan_in, fan_out = dims[i], dims[i + 1]
        bound = 1.0 / jnp.sqrt(fan_in)
        w = jax.random.uniform(k_w, (fan_in, fan_out), jnp.float32, -bound, bound)
        b = jax.random.uniform(k_b, (1, fan_out), jnp.float32, -bound, bound)
        params.append((w, b))
    return params


def reference_forward(x_nchw, params):
    """Pure-JAX f32 reference of the PyTorch module."""
    x = x_nchw.reshape(x_nchw.shape[0], -1).astype(jnp.float32)
    for i, (w, b) in enumerate(params):
        x = x @ w + b
        if i < len(params) - 1:
            x = jnp.maximum(x, 0.0)
    return jax.nn.softmax(x, axis=-1)


if __name__ == "__main__":
    key = jax.random.PRNGKey(0)
    k_x, k_p = jax.random.split(key)
    # MNIST-like input implied by Linear(784, ...): (batch, 1, 28, 28), NCHW
    x = jax.random.normal(k_x, (2, 1, 28, 28), dtype=jnp.float32)
    params = init_params(k_p)

    out = mlp_forward(x, params)
    jax.block_until_ready(out)

    ref = reference_forward(x, params)
    assert out.shape == (2, OUT_CLASSES)
    # bf16 weights/activations/output vs f32 reference -> relaxed tolerance.
    assert jnp.allclose(out, ref, atol=3e-2, rtol=3e-2)
    # Softmax rows still sum to ~1 (bf16 output + approx reciprocal).
    assert jnp.allclose(jnp.sum(out, axis=-1), 1.0, atol=1e-2)
    print("KERNEL_OK")
</pallas_src>

<mosaic_0001>
module attributes {stable_mosaic.version = 11 : i64} {
  func.func @mlp_kernel(%arg0: i32, %arg1: memref<16x784xf32, #tpu.memory_space<vmem>>, %arg2: memref<784x512xbf16, #tpu.memory_space<vmem>>, %arg3: memref<1x512xf32, #tpu.memory_space<vmem>>, %arg4: memref<512x256xbf16, #tpu.memory_space<vmem>>, %arg5: memref<1x256xf32, #tpu.memory_space<vmem>>, %arg6: memref<256x128xbf16, #tpu.memory_space<vmem>>, %arg7: memref<1x128xf32, #tpu.memory_space<vmem>>, %arg8: memref<128x64xbf16, #tpu.memory_space<vmem>>, %arg9: memref<1x64xf32, #tpu.memory_space<vmem>>, %arg10: memref<64x128xbf16, #tpu.memory_space<vmem>>, %arg11: memref<1x128xf32, #tpu.memory_space<vmem>>, %arg12: memref<16x128xbf16, #tpu.memory_space<vmem>>) attributes {dimension_semantics = [#tpu.dimension_semantics<parallel>], iteration_bounds = array<i64: 1>, scalar_prefetch = 0 : i64, scratch_operands = 0 : i64, tpu.core_type = #tpu.core_type<tc>, window_params = [{transform_indices = @transform_0, window_bounds = array<i64: 16, 784>}, {pipeline_mode = #tpu.pipeline_mode<synchronous>, transform_indices = @transform_1, window_bounds = array<i64: 784, 512>}, {pipeline_mode = #tpu.pipeline_mode<synchronous>, transform_indices = @transform_2, window_bounds = array<i64: 1, 512>}, {pipeline_mode = #tpu.pipeline_mode<synchronous>, transform_indices = @transform_3, window_bounds = array<i64: 512, 256>}, {pipeline_mode = #tpu.pipeline_mode<synchronous>, transform_indices = @transform_4, window_bounds = array<i64: 1, 256>}, {pipeline_mode = #tpu.pipeline_mode<synchronous>, transform_indices = @transform_5, window_bounds = array<i64: 256, 128>}, {pipeline_mode = #tpu.pipeline_mode<synchronous>, transform_indices = @transform_6, window_bounds = array<i64: 1, 128>}, {pipeline_mode = #tpu.pipeline_mode<synchronous>, transform_indices = @transform_7, window_bounds = array<i64: 128, 64>}, {pipeline_mode = #tpu.pipeline_mode<synchronous>, transform_indices = @transform_8, window_bounds = array<i64: 1, 64>}, {pipeline_mode = #tpu.pipeline_mode<synchronous>, transform_indices = @transform_9, window_bounds = array<i64: 64, 128>}, {pipeline_mode = #tpu.pipeline_mode<synchronous>, transform_indices = @transform_10, window_bounds = array<i64: 1, 128>}, {transform_indices = @transform_11, window_bounds = array<i64: 16, 128>}]} {
    %c0 = arith.constant 0 : index
    %c0_0 = arith.constant 0 : index
    %0 = vector.load %arg1[%c0, %c0_0] : memref<16x784xf32, #tpu.memory_space<vmem>>, vector<16x784xf32>
    %1 = arith.truncf %0 : vector<16x784xf32> to vector<16x784xbf16>
    %c0_1 = arith.constant 0 : index
    %c0_2 = arith.constant 0 : index
    %2 = vector.load %arg2[%c0_1, %c0_2] : memref<784x512xbf16, #tpu.memory_space<vmem>>, vector<784x512xbf16>
    %cst = arith.constant dense<0.000000e+00> : vector<16x512xf32>
    %3 = tpu.matmul %1, %2, %cst {dimension_numbers = #tpu.dot_dimension_numbers<[1], [0], [0], [1], [0, 0, 1, 1], [], []>} : vector<16x784xbf16>, vector<784x512xbf16>, vector<16x512xf32> -> vector<16x512xf32>
    %c0_3 = arith.constant 0 : index
    %c0_4 = arith.constant 0 : index
    %4 = vector.load %arg3[%c0_3, %c0_4] : memref<1x512xf32, #tpu.memory_space<vmem>>, vector<1x512xf32>
    %5 = vector.broadcast %4 : vector<1x512xf32> to vector<16x512xf32>
    %6 = arith.addf %3, %5 : vector<16x512xf32>
    %cst_5 = arith.constant 0.000000e+00 : f32
    %7 = vector.broadcast %cst_5 : f32 to vector<16x512xf32>
    %8 = arith.maximumf %6, %7 : vector<16x512xf32>
    %9 = arith.truncf %8 : vector<16x512xf32> to vector<16x512xbf16>
    %c0_6 = arith.constant 0 : index
    %c0_7 = arith.constant 0 : index
    %10 = vector.load %arg4[%c0_6, %c0_7] : memref<512x256xbf16, #tpu.memory_space<vmem>>, vector<512x256xbf16>
    %cst_8 = arith.constant dense<0.000000e+00> : vector<16x256xf32>
    %11 = tpu.matmul %9, %10, %cst_8 {dimension_numbers = #tpu.dot_dimension_numbers<[1], [0], [0], [1], [0, 0, 1, 1], [], []>} : vector<16x512xbf16>, vector<512x256xbf16>, vector<16x256xf32> -> vector<16x256xf32>
    %c0_9 = arith.constant 0 : index
    %c0_10 = arith.constant 0 : index
    %12 = vector.load %arg5[%c0_9, %c0_10] : memref<1x256xf32, #tpu.memory_space<vmem>>, vector<1x256xf32>
    %13 = vector.broadcast %12 : vector<1x256xf32> to vector<16x256xf32>
    %14 = arith.addf %11, %13 : vector<16x256xf32>
    %cst_11 = arith.constant 0.000000e+00 : f32
    %15 = vector.broadcast %cst_11 : f32 to vector<16x256xf32>
    %16 = arith.maximumf %14, %15 : vector<16x256xf32>
    %17 = arith.truncf %16 : vector<16x256xf32> to vector<16x256xbf16>
    %c0_12 = arith.constant 0 : index
    %c0_13 = arith.constant 0 : index
    %18 = vector.load %arg6[%c0_12, %c0_13] : memref<256x128xbf16, #tpu.memory_space<vmem>>, vector<256x128xbf16>
    %cst_14 = arith.constant dense<0.000000e+00> : vector<16x128xf32>
    %19 = tpu.matmul %17, %18, %cst_14 {dimension_numbers = #tpu.dot_dimension_numbers<[1], [0], [0], [1], [0, 0, 1, 1], [], []>} : vector<16x256xbf16>, vector<256x128xbf16>, vector<16x128xf32> -> vector<16x128xf32>
    %c0_15 = arith.constant 0 : index
    %c0_16 = arith.constant 0 : index
    %20 = vector.load %arg7[%c0_15, %c0_16] : memref<1x128xf32, #tpu.memory_space<vmem>>, vector<1x128xf32>
    %21 = vector.broadcast %20 : vector<1x128xf32> to vector<16x128xf32>
    %22 = arith.addf %19, %21 : vector<16x128xf32>
    %cst_17 = arith.constant 0.000000e+00 : f32
    %23 = vector.broadcast %cst_17 : f32 to vector<16x128xf32>
    %24 = arith.maximumf %22, %23 : vector<16x128xf32>
    %25 = arith.truncf %24 : vector<16x128xf32> to vector<16x128xbf16>
    %c0_18 = arith.constant 0 : index
    %c0_19 = arith.constant 0 : index
    %26 = vector.load %arg8[%c0_18, %c0_19] : memref<128x64xbf16, #tpu.memory_space<vmem>>, vector<128x64xbf16>
    %cst_20 = arith.constant dense<0.000000e+00> : vector<16x64xf32>
    %27 = tpu.matmul %25, %26, %cst_20 {dimension_numbers = #tpu.dot_dimension_numbers<[1], [0], [0], [1], [0, 0, 1, 1], [], []>} : vector<16x128xbf16>, vector<128x64xbf16>, vector<16x64xf32> -> vector<16x64xf32>
    %c0_21 = arith.constant 0 : index
    %c0_22 = arith.constant 0 : index
    %28 = vector.load %arg9[%c0_21, %c0_22] : memref<1x64xf32, #tpu.memory_space<vmem>>, vector<1x64xf32>
    %29 = vector.broadcast %28 : vector<1x64xf32> to vector<16x64xf32>
    %30 = arith.addf %27, %29 : vector<16x64xf32>
    %cst_23 = arith.constant 0.000000e+00 : f32
    %31 = vector.broadcast %cst_23 : f32 to vector<16x64xf32>
    %32 = arith.maximumf %30, %31 : vector<16x64xf32>
    %33 = arith.truncf %32 : vector<16x64xf32> to vector<16x64xbf16>
    %c0_24 = arith.constant 0 : index
    %c0_25 = arith.constant 0 : index
    %34 = vector.load %arg10[%c0_24, %c0_25] : memref<64x128xbf16, #tpu.memory_space<vmem>>, vector<64x128xbf16>
    %cst_26 = arith.constant dense<0.000000e+00> : vector<16x128xf32>
    %35 = tpu.matmul %33, %34, %cst_26 {dimension_numbers = #tpu.dot_dimension_numbers<[1], [0], [0], [1], [0, 0, 1, 1], [], []>} : vector<16x64xbf16>, vector<64x128xbf16>, vector<16x128xf32> -> vector<16x128xf32>
    %c0_27 = arith.constant 0 : index
    %c0_28 = arith.constant 0 : index
    %36 = vector.load %arg11[%c0_27, %c0_28] : memref<1x128xf32, #tpu.memory_space<vmem>>, vector<1x128xf32>
    %37 = vector.broadcast %36 : vector<1x128xf32> to vector<16x128xf32>
    %38 = arith.addf %35, %37 : vector<16x128xf32>
    %cst_29 = arith.constant dense<0xFF800000> : vector<16xf32>
    %39 = vector.multi_reduction <maximumf>, %38, %cst_29 [1] : vector<16x128xf32> to vector<16xf32>
    %40 = vector.shape_cast %39 : vector<16xf32> to vector<16x1xf32>
    %41 = vector.broadcast %40 : vector<16x1xf32> to vector<16x128xf32>
    %42 = arith.subf %38, %41 : vector<16x128xf32>
    %43 = math.exp %42 : vector<16x128xf32>
    %cst_30 = arith.constant dense<0.000000e+00> : vector<16xf32>
    %44 = vector.multi_reduction <add>, %43, %cst_30 [1] : vector<16x128xf32> to vector<16xf32>
    %45 = vector.shape_cast %44 : vector<16xf32> to vector<16x1xf32>
    %46 = tpu.reciprocal %45 {approx = true} : vector<16x1xf32> -> vector<16x1xf32>
    %47 = vector.broadcast %46 : vector<16x1xf32> to vector<16x128xf32>
    %48 = arith.mulf %43, %47 : vector<16x128xf32>
    %49 = arith.truncf %48 : vector<16x128xf32> to vector<16x128xbf16>
    %c0_31 = arith.constant 0 : index
    %c0_32 = arith.constant 0 : index
    %50 = vector.load %arg12[%c0_31, %c0_32] : memref<16x128xbf16, #tpu.memory_space<vmem>>, vector<16x128xbf16>
    tpu.vector_store %arg12[%c0_31, %c0_32], %49 {strides = array<i32>} : memref<16x128xbf16, #tpu.memory_space<vmem>>, vector<16x128xbf16>,
    return
  }
  func.func @transform_0(%arg0: i32) -> (i32, i32) {
    %c0_i32 = arith.constant 0 : i32
    %c0_i32_0 = arith.constant 0 : i32
    return %arg0, %c0_i32 : i32, i32
  }
  func.func @transform_1(%arg0: i32) -> (i32, i32) {
    %c0_i32 = arith.constant 0 : i32
    %c0_i32_0 = arith.constant 0 : i32
    %c0_i32_1 = arith.constant 0 : i32
    return %c0_i32, %c0_i32_0 : i32, i32
  }
  func.func @transform_2(%arg0: i32) -> (i32, i32) {
    %c0_i32 = arith.constant 0 : i32
    %c0_i32_0 = arith.constant 0 : i32
    %c0_i32_1 = arith.constant 0 : i32
    return %c0_i32, %c0_i32_0 : i32, i32
  }
  func.func @transform_3(%arg0: i32) -> (i32, i32) {
    %c0_i32 = arith.constant 0 : i32
    %c0_i32_0 = arith.constant 0 : i32
    %c0_i32_1 = arith.constant 0 : i32
    return %c0_i32, %c0_i32_0 : i32, i32
  }
  func.func @transform_4(%arg0: i32) -> (i32, i32) {
    %c0_i32 = arith.constant 0 : i32
    %c0_i32_0 = arith.constant 0 : i32
    %c0_i32_1 = arith.constant 0 : i32
    return %c0_i32, %c0_i32_0 : i32, i32
  }
  func.func @transform_5(%arg0: i32) -> (i32, i32) {
    %c0_i32 = arith.constant 0 : i32
    %c0_i32_0 = arith.constant 0 : i32
    %c0_i32_1 = arith.constant 0 : i32
    return %c0_i32, %c0_i32_0 : i32, i32
  }
  func.func @transform_6(%arg0: i32) -> (i32, i32) {
    %c0_i32 = arith.constant 0 : i32
    %c0_i32_0 = arith.constant 0 : i32
    %c0_i32_1 = arith.constant 0 : i32
    return %c0_i32, %c0_i32_0 : i32, i32
  }
  func.func @transform_7(%arg0: i32) -> (i32, i32) {
    %c0_i32 = arith.constant 0 : i32
    %c0_i32_0 = arith.constant 0 : i32
    %c0_i32_1 = arith.constant 0 : i32
    return %c0_i32, %c0_i32_0 : i32, i32
  }
  func.func @transform_8(%arg0: i32) -> (i32, i32) {
    %c0_i32 = arith.constant 0 : i32
    %c0_i32_0 = arith.constant 0 : i32
    %c0_i32_1 = arith.constant 0 : i32
    return %c0_i32, %c0_i32_0 : i32, i32
  }
  func.func @transform_9(%arg0: i32) -> (i32, i32) {
    %c0_i32 = arith.constant 0 : i32
    %c0_i32_0 = arith.constant 0 : i32
    %c0_i32_1 = arith.constant 0 : i32
    return %c0_i32, %c0_i32_0 : i32, i32
  }
  func.func @transform_10(%arg0: i32) -> (i32, i32) {
    %c0_i32 = arith.constant 0 : i32
    %c0_i32_0 = arith.constant 0 : i32
    %c0_i32_1 = arith.constant 0 : i32
    return %c0_i32, %c0_i32_0 : i32, i32
  }
  func.func @transform_11(%arg0: i32) -> (i32, i32) {
    %c0_i32 = arith.constant 0 : i32
    %c0_i32_0 = arith.constant 0 : i32
    return %arg0, %c0_i32 : i32, i32
  }
}

</mosaic_0001>

<bundles_post_ra>
// kernel: tpu_custom_call.1
= control target key start
LH: loop header
LB: loop body
LE: loop exit
PB: predicated region body
PF: predicated region fallthrough
CT: control target
= control target key end

     0   :  { %16 = vsyncpa [#allocation3], 0  ;;  %s3801_s0 = inlined_call_operand.hbm [shape: f32[16,784], index: 0, kind: input, shape index: {}]   ;;  %s3802_s1 = inlined_call_operand.hbm [shape: bf16[784,512], index: 1, kind: input, shape index: {}]   ;;  %s3803_s2 = inlined_call_operand.vmem [shape: f32[1,512], index: 2, kind: input, shape index: {}]   ;;  %s3804_s3 = inlined_call_operand.hbm [shape: bf16[512,256], index: 3, kind: input, shape index: {}]   ;;  %s3805_s4 = inlined_call_operand.vmem [shape: f32[1,256], index: 4, kind: input, shape index: {}]   ;;  %s3806_s5 = inlined_call_operand.hbm [shape: bf16[256,128], index: 5, kind: input, shape index: {}]   ;;  %s3807_s6 = inlined_call_operand.vmem [shape: f32[1,128], index: 6, kind: input, shape index: {}]   ;;  %s3808_s7 = inlined_call_operand.vmem [shape: bf16[128,64], index: 7, kind: input, shape index: {}]   ;;  %s3809_s8 = inlined_call_operand.vmem [shape: f32[1,64], index: 8, kind: input, shape index: {}]   ;;  %s3810_s9 = inlined_call_operand.vmem [shape: bf16[64,128], index: 9, kind: input, shape index: {}]   ;;  %s3811_s10 = inlined_call_operand.vmem [shape: f32[1,128], index: 10, kind: input, shape index: {}]   ;;  %s3812_s11 = inlined_call_operand.hbm [shape: bf16[16,128], index: 11, kind: output, shape index: {}]  }
   0x1   :  { %17 = vsyncpa [#allocation6], 0 }
   0x2   :  { %18 = vsyncpa [#allocation9], 0 }
   0x3   :  { %19 = vsyncpa [#allocation4], 0  ;;  %s3558_s17 = smov [#allocation5]   ;;  %s3440_s21 = scalar_lea.hbm %s3802_s1, 25088 }
   0x4   :  { %s37_s18 = sshll.u32 %s3558_s17, 4  ;;  %p3441_p0 = scmp.ne.s32.totalorder %s3802_s1, %s3440_s21  ;;  %s38_s18 = int_to_ptr.vmem [resolvable:$true] %s37_s18 }
   0x5   :  { %p3444_p1 = scmp.lt.u32.totalorder %s3440_s21, %s3802_s1 }
   0x7   :  { %p3446_p2 = pnand %p3444_p1, %p3441_p0 }
   0x9   :  { %3449 = shalt.err (!%p3446_p2)
}
   0xa   :  { %s3450_s26 = scalar_lea.vmem %s38_s18, 25088  ;;  %p3455_p4 = scmp.lt.s32.totalorder %s38_s18, %s38_s18 }
   0xb   :  { %p3451_p3 = scmp.ne.s32.totalorder %s38_s18, %s3450_s26  ;;  %p3456_p5 = scmp.lt.s32.totalorder %s3450_s26, %s3450_s26 }
   0xd   :  { %p3457_p6 = por %p3456_p5, %p3455_p4 }
   0xf   :  { %p3458_p7 = pnand %p3457_p6, %p3451_p3 }
  0x11   :  { %3461 = shalt.err (!%p3458_p7)
}
  0x12   :  { %s3559_s27 = smov 256   ;;  %s3560_s28 = smov 16  }
  0x13   :  { %43 = dma.hbm_to_vmem [thread:$0]  %s3802_s1, 25088, %s38_s18, [#allocation6], %s3559_s27, %s3559_s27, %s3560_s28  }
  0x14   :  { %s3561_s12 = smov [#allocation2]   ;;  %s3462_s16 = scalar_lea.hbm %s3801_s0, 1792 }
  0x15   :  { %s25_s13 = sshll.u32 %s3561_s12, 4  ;;  %p3463_p8 = scmp.ne.s32.totalorder %s3801_s0, %s3462_s16  ;;  %s26_s13 = int_to_ptr.vmem [resolvable:$true] %s25_s13 }
  0x16   :  { %p3466_p9 = scmp.lt.u32.totalorder %s3462_s16, %s3801_s0 }
  0x18   :  { %p3468_p10 = pnand %p3466_p9, %p3463_p8 }
  0x1a   :  { %3471 = shalt.err (!%p3468_p10)
}
  0x1b   :  { %s3472_s22 = scalar_lea.vmem %s26_s13, 1792  ;;  %p3477_p12 = scmp.lt.s32.totalorder %s26_s13, %s26_s13 }
  0x1c   :  { %p3473_p11 = scmp.ne.s32.totalorder %s26_s13, %s3472_s22  ;;  %p3478_p13 = scmp.lt.s32.totalorder %s3472_s22, %s3472_s22 }
  0x1e   :  { %p3479_p0 = por %p3478_p13, %p3477_p12 }
  0x20   :  { %p3480_p1 = pnand %p3479_p0, %p3473_p11 }
  0x22   :  { %3483 = shalt.err (!%p3480_p1)
}
  0x23   :  { %s3562_s1 = smov 896   ;;  %s3563_s18 = smov 56  }
  0x24   :  { %31 = dma.hbm_to_vmem [thread:$0]  %s3801_s0, 1792, %s26_s13, [#allocation3], %s3562_s1, %s3562_s1, %s3563_s18  }
  0x25   :  { %s3564_s25 = smov [#allocation7]   ;;  %s3484_s29 = scalar_lea.hbm %s3804_s3, 8192 }
  0x26   :  { %s51_s26 = sshll.u32 %s3564_s25, 4  ;;  %p3485_p2 = scmp.ne.s32.totalorder %s3804_s3, %s3484_s29  ;;  %s52_s26 = int_to_ptr.vmem [resolvable:$true] %s51_s26 }
  0x27   :  { %p3488_p3 = scmp.lt.u32.totalorder %s3484_s29, %s3804_s3 }
  0x29   :  { %p3490_p4 = pnand %p3488_p3, %p3485_p2 }
  0x2b   :  { %3493 = shalt.err (!%p3490_p4)
}
  0x2c   :  { %s3494_s16 = scalar_lea.vmem %s52_s26, 8192  ;;  %p3499_p6 = scmp.lt.s32.totalorder %s52_s26, %s52_s26 }
  0x2d   :  { %p3495_p5 = scmp.ne.s32.totalorder %s52_s26, %s3494_s16  ;;  %p3500_p7 = scmp.lt.s32.totalorder %s3494_s16, %s3494_s16 }
  0x2f   :  { %p3501_p8 = por %p3500_p7, %p3499_p6 }
  0x31   :  { %p3502_p9 = pnand %p3501_p8, %p3495_p5 }
  0x33   :  { %3505 = shalt.err (!%p3502_p9)
}
  0x34   :  { %s3565_s0 = smov 128   ;;  %s3566_s13 = smov 8  }
  0x35   :  { %57 = dma.hbm_to_vmem [thread:$0]  %s3804_s3, 8192, %s52_s26, [#allocation6], %s3565_s0, %s3565_s0, %s3566_s13  }
  0x36   :  { %s3567_s20 = smov [#allocation8]   ;;  %s3506_s18 = scalar_lea.hbm %s3806_s5, 2048 }
  0x37   :  { %s65_s21 = sshll.u32 %s3567_s20, 4  ;;  %p3507_p10 = scmp.ne.s32.totalorder %s3806_s5, %s3506_s18  ;;  %s66_s21 = int_to_ptr.vmem [resolvable:$true] %s65_s21 }
  0x38   :  { %p3510_p11 = scmp.lt.u32.totalorder %s3506_s18, %s3806_s5 }
  0x3a   :  { %p3512_p12 = pnand %p3510_p11, %p3507_p10 }
  0x3c   :  { %3515 = shalt.err (!%p3512_p12)
}
  0x3d   :  { %s3516_s28 = scalar_lea.vmem %s66_s21, 2048  ;;  %p3521_p0 = scmp.lt.s32.totalorder %s66_s21, %s66_s21 }
  0x3e   :  { %p3517_p13 = scmp.ne.s32.totalorder %s66_s21, %s3516_s28  ;;  %p3522_p1 = scmp.lt.s32.totalorder %s3516_s28, %s3516_s28 }
  0x40   :  { %p3523_p2 = por %p3522_p1, %p3521_p0 }
  0x42   :  { %p3524_p3 = pnand %p3523_p2, %p3517_p13 }
  0x44   :  { %3527 = shalt.err (!%p3524_p3)
}
  0x45   :  { %s3568_s3 = smov 64   ;;  %s3569_s26 = smov 4  }
  0x46   :  { %71 = dma.hbm_to_vmem [thread:$0]  %s3806_s5, 2048, %s66_s21, [#allocation9], %s3568_s3, %s3568_s3, %s3569_s26  }
  0x47   :  { %3550 = dma.done.wait [#allocation3], 1792  }
  0x48   :  { %3551 = vsyncadd [#allocation3], 4294965504 }
  0x49   :  { %3552 = dma.done.wait [#allocation6], 33280  }
  0x4a   :  { %3553 = vsyncadd [#allocation6], 4294934016 }
  0x4b   :  { %3554 = dma.done.wait [#allocation9], 2048  }
  0x4c   :  { %3555 = vsyncadd [#allocation9], 4294965248  ;;  %v3570_v0 = vmov 0   ;;  %v3014_v1 = vld [vmem:[#allocation5 + $0x4] ss:$16 sps:$4 sm:$0xff]   ;;  %v108_v10 = vld [vmem:[#allocation2 + $0x68] sm:$0xff] }
  0x4d   :  { %1479 = vmatprep.mubr.bf16.mxu1 %v3570_v0  ;;  %v3016_v2 = vld [vmem:[#allocation5 + $0x604] ss:$16 sps:$4 sm:$0xff]   ;;  %1318 = vmatprep.subr.bf16.mxu0 %v3014_v1  ;;  %v3018_v3 = vld [vmem:[#allocation5] ss:$16 sps:$4 sm:$0xff]   ;;  %v3022_v6 = vld [vmem:[#allocation5 + $0x8] ss:$16 sps:$4 sm:$0xff]  }
  0x4e   :  { %v3019_v4 = vld [vmem:[#allocation5 + $0x600] ss:$16 sps:$4 sm:$0xff]   ;;  %1447 = vmatprep.subr.bf16.mxu1 %v3016_v2  ;;  %v3020_v5 = vld [vmem:[#allocation5 + $0x24] ss:$16 sps:$4 sm:$0xff]   ;;  %1319 = vmatpush1.bf16.msra.mxu0 %v3018_v3  ;;  %v3024_v7 = vld [vmem:[#allocation5 + $0xc] ss:$16 sps:$4 sm:$0xff]  }
  0x4f   :  { %1448 = vmatpush1.bf16.msra.mxu1 %v3019_v4  ;;  %1320 = vmatprep.subr.bf16.mxu0 %v3020_v5  ;;  %v3025_v8 = vld [vmem:[#allocation5 + $0x20] ss:$16 sps:$4 sm:$0xff]   ;;  %vm1314_vm0 = vcmask 130048   ;;  %v3026_v12 = vld [vmem:[#allocation5 + $0x44] ss:$16 sps:$4 sm:$0xff]   ;;  %v96_v51 = vld [vmem:[#allocation2 + $0x8] sm:$0xff] }
  0x50   :  { %v101_v9 = vld [vmem:[#allocation2 + $0x30] sm:$0xff]  ;;  %1490 = vmatprep.subr.bf16.mxu1 %v3024_v7  ;;  %v3028_v13 = vld [vmem:[#allocation5 + $0x28] ss:$16 sps:$4 sm:$0xff]   ;;  %v3030_v14 = vld [vmem:[#allocation5 + $0x2c] ss:$16 sps:$4 sm:$0xff]   ;;  %vm3572_vm1 = vmmov 0  }
  0x51   :  { %v3686_v11 = vpack.c.bf16 %v108_v10, %v101_v9  ;;  %v3031_v15 = vld [vmem:[#allocation5 + $0x40] ss:$16 sps:$4 sm:$0xff]   ;;  %v3032_v16 = vld [vmem:[#allocation5 + $0x64] ss:$16 sps:$4 sm:$0xff]   ;;  %v3036_v17 = vld [vmem:[#allocation5 + $0x4c] ss:$16 sps:$4 sm:$0xff]  }
  0x52   :  { %1321 = vmatpush1.bf16.msra.mxu0 %v3025_v8  ;;  %v3037_v18 = vld [vmem:[#allocation5 + $0x60] ss:$16 sps:$4 sm:$0xff]   ;;  %v3034_v19 = vld [vmem:[#allocation5 + $0x48] ss:$16 sps:$4 sm:$0xff]   ;;  %v3038_v20 = vld [vmem:[#allocation5 + $0x84] ss:$16 sps:$4 sm:$0xff]  }
  0x53   :  { %2783 = vmatmul.mubr.msk.bf16.vlgmr.msra.gmra.mrb[0].mxu1 %vm1314_vm0, %v3686_v11  ;;  %1322 = vmatprep.subr.bf16.mxu0 %v3026_v12  ;;  %v3042_v21 = vld [vmem:[#allocation5 + $0x6c] ss:$16 sps:$4 sm:$0xff]   ;;  %v3040_v22 = vld [vmem:[#allocation5 + $0x68] ss:$16 sps:$4 sm:$0xff]   ;;  %v3043_v23 = vld [vmem:[#allocation5 + $0x80] ss:$16 sps:$4 sm:$0xff]  }
  0x54   :  { %1491 = vmatpush1.bf16.msra.mxu1 %v3022_v6  ;;  %v3044_v24 = vld [vmem:[#allocation5 + $0xa4] ss:$16 sps:$4 sm:$0xff]   ;;  %v3048_v25 = vld [vmem:[#allocation5 + $0x8c] ss:$16 sps:$4 sm:$0xff]   ;;  %v3049_v26 = vld [vmem:[#allocation5 + $0xa0] ss:$16 sps:$4 sm:$0xff]  }
  0x55   :  { %1492 = vmatprep.subr.bf16.mxu1 %v3030_v14  ;;  %v3046_v27 = vld [vmem:[#allocation5 + $0x88] ss:$16 sps:$4 sm:$0xff]   ;;  %v3050_v28 = vld [vmem:[#allocation5 + $0xc4] ss:$16 sps:$4 sm:$0xff]   ;;  %v3054_v29 = vld [vmem:[#allocation5 + $0xac] ss:$16 sps:$4 sm:$0xff]  }
  0x56   :  { %1323 = vmatpush1.bf16.msra.mxu0 %v3031_v15  ;;  %v3052_v30 = vld [vmem:[#allocation5 + $0xa8] ss:$16 sps:$4 sm:$0xff]   ;;  %v3055_v31 = vld [vmem:[#allocation5 + $0xc0] ss:$16 sps:$4 sm:$0xff]   ;;  %v3056_v32 = vld [vmem:[#allocation5 + $0xe4] ss:$16 sps:$4 sm:$0xff]  }
  0x57   :  { %1324 = vmatprep.subr.bf16.mxu0 %v3032_v16  ;;  %v3060_v33 = vld [vmem:[#allocation5 + $0xcc] ss:$16 sps:$4 sm:$0xff]   ;;  %v3061_v34 = vld [vmem:[#allocation5 + $0xe0] ss:$16 sps:$4 sm:$0xff]   ;;  %v3058_v35 = vld [vmem:[#allocation5 + $0xc8] ss:$16 sps:$4 sm:$0xff]  }
  0x58   :  { %1493 = vmatpush1.bf16.msra.mxu1 %v3028_v13  ;;  %v3062_v36 = vld [vmem:[#allocation5 + $0x104] ss:$16 sps:$4 sm:$0xff]   ;;  %v3066_v37 = vld [vmem:[#allocation5 + $0xec] ss:$16 sps:$4 sm:$0xff]   ;;  %v3064_v38 = vld [vmem:[#allocation5 + $0xe8] ss:$16 sps:$4 sm:$0xff]  }
  0x59   :  { %1494 = vmatprep.subr.bf16.mxu1 %v3036_v17  ;;  %v3067_v39 = vld [vmem:[#allocation5 + $0x100] ss:$16 sps:$4 sm:$0xff]   ;;  %v3068_v40 = vld [vmem:[#allocation5 + $0x124] ss:$16 sps:$4 sm:$0xff]   ;;  %v3072_v41 = vld [vmem:[#allocation5 + $0x10c] ss:$16 sps:$4 sm:$0xff]  }
  0x5a   :  { %1325 = vmatpush1.bf16.msra.mxu0 %v3037_v18  ;;  %v3073_v42 = vld [vmem:[#allocation5 + $0x120] ss:$16 sps:$4 sm:$0xff]   ;;  %v3070_v43 = vld [vmem:[#allocation5 + $0x108] ss:$16 sps:$4 sm:$0xff]   ;;  %v3074_v44 = vld [vmem:[#allocation5 + $0x144] ss:$16 sps:$4 sm:$0xff]  }
  0x5b   :  { %1326 = vmatprep.subr.bf16.mxu0 %v3038_v20  ;;  %v3078_v45 = vld [vmem:[#allocation5 + $0x12c] ss:$16 sps:$4 sm:$0xff]   ;;  %v3076_v46 = vld [vmem:[#allocation5 + $0x128] ss:$16 sps:$4 sm:$0xff]   ;;  %v3079_v47 = vld [vmem:[#allocation5 + $0x140] ss:$16 sps:$4 sm:$0xff]  }
  0x5c   :  { %1495 = vmatpush1.bf16.msra.mxu1 %v3034_v19  ;;  %v3080_v48 = vld [vmem:[#allocation5 + $0x164] ss:$16 sps:$4 sm:$0xff]   ;;  %v3084_v49 = vld [vmem:[#allocation5 + $0x14c] ss:$16 sps:$4 sm:$0xff]   ;;  %v3082_v50 = vld [vmem:[#allocation5 + $0x148] ss:$16 sps:$4 sm:$0xff]  }
  0x5d   :  { %1496 = vmatprep.subr.bf16.mxu1 %v3042_v21  ;;  %v103_v52 = vld [vmem:[#allocation2 + $0x40] sm:$0xff]  ;;  %v3090_v56 = vld [vmem:[#allocation5 + $0x16c] ss:$16 sps:$4 sm:$0xff]   ;;  %v3088_v58 = vld [vmem:[#allocation5 + $0x168] ss:$16 sps:$4 sm:$0xff]   ;;  %vm2495_vm2 = vcmask 523264  }
  0x5e   :  { %1327 = vmatpush1.bf16.msra.mxu0 %v3043_v23  ;;  %v3085_v53 = vld [vmem:[#allocation5 + $0x160] ss:$16 sps:$4 sm:$0xff]   ;;  %v110_v54 = vpack.c.bf16 %v103_v52, %v96_v51  ;;  %v3086_v55 = vld [vmem:[#allocation5 + $0x184] ss:$16 sps:$4 sm:$0xff]   ;;  %v3096_v60 = vld [vmem:[#allocation5 + $0x18c] ss:$16 sps:$4 sm:$0xff]  }
  0x5f   :  { %1328 = vmatprep.subr.bf16.mxu0 %v3044_v24  ;;  %v3091_v57 = vld [vmem:[#allocation5 + $0x180] ss:$16 sps:$4 sm:$0xff]   ;;  %v3092_v59 = vld [vmem:[#allocation5 + $0x1a4] ss:$16 sps:$4 sm:$0xff]   ;;  %v3094_v62 = vld [vmem:[#allocation5 + $0x188] ss:$16 sps:$4 sm:$0xff]  }
  0x60   :  { %1497 = vmatpush1.bf16.msra.mxu1 %v3040_v22  ;;  %1350 = vmatprep.mubr.bf16.mxu0 %v110_v54  ;;  %v3097_v61 = vld [vmem:[#allocation5 + $0x1a0] ss:$16 sps:$4 sm:$0xff]   ;;  %v3098_v63 = vld [vmem:[#allocation5 + $0x1c4] ss:$16 sps:$4 sm:$0xff]   ;;  %v3102_v1 = vld [vmem:[#allocation5 + $0x1ac] ss:$16 sps:$4 sm:$0xff]  }
  0x61   :  { %1498 = vmatprep.subr.bf16.mxu1 %v3048_v25  ;;  %1522 = vmatprep.mubr.bf16.mxu1 %v110_v54  ;;  %v3103_v2 = vld [vmem:[#allocation5 + $0x1c0] ss:$16 sps:$4 sm:$0xff]   ;;  %v3100_v3 = vld [vmem:[#allocation5 + $0x1a8] ss:$16 sps:$4 sm:$0xff]   ;;  %v3104_v4 = vld [vmem:[#allocation5 + $0x1e4] ss:$16 sps:$4 sm:$0xff]  }
  0x62   :  { %1329 = vmatpush1.bf16.msra.mxu0 %v3049_v26  ;;  %v3108_v5 = vld [vmem:[#allocation5 + $0x1cc] ss:$16 sps:$4 sm:$0xff]   ;;  %v3109_v6 = vld [vmem:[#allocation5 + $0x1e0] ss:$16 sps:$4 sm:$0xff]   ;;  %v3106_v9 = vld [vmem:[#allocation5 + $0x1c8] ss:$16 sps:$4 sm:$0xff]  }
  0x63   :  { %1330 = vmatprep.subr.bf16.mxu0 %v3050_v28  ;;  %v95_v7 = vld [vmem:[#allocation2] sm:$0xff]  ;;  %v102_v8 = vld [vmem:[#allocation2 + $0x38] sm:$0xff] }
  0x64   :  { %1499 = vmatpush1.bf16.msra.mxu1 %v3046_v27  ;;  %v3112_v10 = vld [vmem:[#allocation5 + $0x204] ss:$16 sps:$4 sm:$0xff]   ;;  %v3115_v12 = vld [vmem:[#allocation5 + $0x1ec] ss:$16 sps:$4 sm:$0xff]   ;;  %v109_v13 = vpack.c.bf16 %v102_v8, %v95_v7  ;;  %v3110_v14 = vld [vmem:[#allocation5 + $0x200] ss:$16 sps:$4 sm:$0xff]  }
  0x65   :  { %1500 = vmatprep.subr.bf16.mxu1 %v3054_v29  ;;  %v3113_v15 = vld [vmem:[#allocation5 + $0x1e8] ss:$16 sps:$4 sm:$0xff]   ;;  %v3118_v16 = vld [vmem:[#allocation5 + $0x224] ss:$16 sps:$4 sm:$0xff]   ;;  %v3121_v17 = vld [vmem:[#allocation5 + $0x20c] ss:$16 sps:$4 sm:$0xff]  }
  0x66   :  { %1331 = vmatpush1.bf16.msra.mxu0 %v3055_v31  ;;  %v3116_v18 = vld [vmem:[#allocation5 + $0x220] ss:$16 sps:$4 sm:$0xff]   ;;  %v3119_v19 = vld [vmem:[#allocation5 + $0x208] ss:$16 sps:$4 sm:$0xff]   ;;  %v3124_v20 = vld [vmem:[#allocation5 + $0x244] ss:$16 sps:$4 sm:$0xff]  }
  0x67   :  { %1332 = vmatprep.subr.bf16.mxu0 %v3056_v32  ;;  %v3127_v21 = vld [vmem:[#allocation5 + $0x22c] ss:$16 sps:$4 sm:$0xff]   ;;  %v3122_v22 = vld [vmem:[#allocation5 + $0x240] ss:$16 sps:$4 sm:$0xff]   ;;  %v3125_v23 = vld [vmem:[#allocation5 + $0x228] ss:$16 sps:$4 sm:$0xff]  }
  0x68   :  { %1501 = vmatpush1.bf16.msra.mxu1 %v3052_v30  ;;  %v3130_v24 = vld [vmem:[#allocation5 + $0x264] ss:$16 sps:$4 sm:$0xff]   ;;  %v3133_v25 = vld [vmem:[#allocation5 + $0x24c] ss:$16 sps:$4 sm:$0xff]   ;;  %v3128_v26 = vld [vmem:[#allocation5 + $0x260] ss:$16 sps:$4 sm:$0xff]  }
  0x69   :  { %1502 = vmatprep.subr.bf16.mxu1 %v3060_v33  ;;  %v3131_v27 = vld [vmem:[#allocation5 + $0x248] ss:$16 sps:$4 sm:$0xff]   ;;  %v3136_v28 = vld [vmem:[#allocation5 + $0x284] ss:$16 sps:$4 sm:$0xff]   ;;  %v3139_v29 = vld [vmem:[#allocation5 + $0x26c] ss:$16 sps:$4 sm:$0xff]  }
  0x6a   :  { %1333 = vmatpush1.bf16.msra.mxu0 %v3061_v34  ;;  %v3134_v30 = vld [vmem:[#allocation5 + $0x280] ss:$16 sps:$4 sm:$0xff]   ;;  %v3137_v31 = vld [vmem:[#allocation5 + $0x268] ss:$16 sps:$4 sm:$0xff]   ;;  %v3142_v32 = vld [vmem:[#allocation5 + $0x2a4] ss:$16 sps:$4 sm:$0xff]  }
  0x6b   :  { %1334 = vmatprep.subr.bf16.mxu0 %v3062_v36  ;;  %v3145_v33 = vld [vmem:[#allocation5 + $0x28c] ss:$16 sps:$4 sm:$0xff]   ;;  %v3140_v34 = vld [vmem:[#allocation5 + $0x2a0] ss:$16 sps:$4 sm:$0xff]   ;;  %v3148_v36 = vld [vmem:[#allocation5 + $0x2c4] ss:$16 sps:$4 sm:$0xff]  }
  0x6c   :  { %1503 = vmatpush1.bf16.msra.mxu1 %v3058_v35  ;;  %v3143_v35 = vld [vmem:[#allocation5 + $0x288] ss:$16 sps:$4 sm:$0xff]   ;;  %v3166_v51 = vld [vmem:[#allocation5 + $0x324] ss:$16 sps:$4 sm:$0xff]   ;;  %v3169_v52 = vld [vmem:[#allocation5 + $0x30c] ss:$16 sps:$4 sm:$0xff]  }
  0x6d   :  { %1504 = vmatprep.subr.bf16.mxu1 %v3066_v37  ;;  %v3151_v37 = vld [vmem:[#allocation5 + $0x2ac] ss:$16 sps:$4 sm:$0xff]   ;;  %v3167_v54 = vld [vmem:[#allocation5 + $0x308] ss:$16 sps:$4 sm:$0xff]   ;;  %v3196_v8 = vld [vmem:[#allocation5 + $0x3c4] ss:$16 sps:$4 sm:$0xff]  }
  0x6e   :  { %1335 = vmatpush1.bf16.msra.mxu0 %v3067_v39  ;;  %v98_v39 = vld [vmem:[#allocation2 + $0x18] sm:$0xff] }
  0x6f   :  { %1336 = vmatprep.subr.bf16.mxu0 %v3068_v40  ;;  %v105_v40 = vld [vmem:[#allocation2 + $0x50] sm:$0xff]  ;;  %v3191_v7 = vld [vmem:[#allocation5 + $0x388] ss:$16 sps:$4 sm:$0xff]  }
  0x70   :  { %1505 = vmatpush1.bf16.msra.mxu1 %v3064_v38  ;;  %v3146_v38 = vld [vmem:[#allocation5 + $0x2c0] ss:$16 sps:$4 sm:$0xff]  }
  0x71   :  { %1506 = vmatprep.subr.bf16.mxu1 %v3072_v41  ;;  %v3149_v41 = vld [vmem:[#allocation5 + $0x2a8] ss:$16 sps:$4 sm:$0xff]  }
  0x72   :  { %1337 = vmatpush1.bf16.msra.mxu0 %v3073_v42  ;;  %v112_v42 = vpack.c.bf16 %v105_v40, %v98_v39  ;;  %v3232_v39 = vld [vmem:[#allocation5 + $0x484] ss:$16 sps:$4 sm:$0xff]   ;;  %v3235_v40 = vld [vmem:[#allocation5 + $0x46c] ss:$16 sps:$4 sm:$0xff]  }
  0x73   :  { %1338 = vmatprep.subr.bf16.mxu0 %v3074_v44  ;;  %v3157_v44 = vld [vmem:[#allocation5 + $0x2cc] ss:$16 sps:$4 sm:$0xff]  }
  0x74   :  { %1507 = vmatpush1.bf16.msra.mxu1 %v3070_v43  ;;  %v3154_v43 = vld [vmem:[#allocation5 + $0x2e4] ss:$16 sps:$4 sm:$0xff]  }
  0x75   :  { %1508 = vmatprep.subr.bf16.mxu1 %v3078_v45  ;;  %v3152_v45 = vld [vmem:[#allocation5 + $0x2e0] ss:$16 sps:$4 sm:$0xff]  }
  0x76   :  { %1339 = vmatpush1.bf16.msra.mxu0 %v3079_v47  ;;  %v3160_v47 = vld [vmem:[#allocation5 + $0x304] ss:$16 sps:$4 sm:$0xff]  }
  0x77   :  { %1340 = vmatprep.subr.bf16.mxu0 %v3080_v48  ;;  %v3163_v48 = vld [vmem:[#allocation5 + $0x2ec] ss:$16 sps:$4 sm:$0xff]  }
  0x78   :  { %1509 = vmatpush1.bf16.msra.mxu1 %v3076_v46  ;;  %v3155_v46 = vld [vmem:[#allocation5 + $0x2c8] ss:$16 sps:$4 sm:$0xff]  }
  0x79   :  { %1510 = vmatprep.subr.bf16.mxu1 %v3084_v49  ;;  %v3158_v49 = vld [vmem:[#allocation5 + $0x300] ss:$16 sps:$4 sm:$0xff]  }
  0x7a   :  { %1341 = vmatpush1.bf16.msra.mxu0 %v3085_v53  ;;  %v3164_v53 = vld [vmem:[#allocation5 + $0x320] ss:$16 sps:$4 sm:$0xff]  }
  0x7b   :  { %1342 = vmatprep.subr.bf16.mxu0 %v3086_v55  ;;  %v3172_v55 = vld [vmem:[#allocation5 + $0x344] ss:$16 sps:$4 sm:$0xff]  }
  0x7c   :  { %1511 = vmatpush1.bf16.msra.mxu1 %v3082_v50  ;;  %v3161_v50 = vld [vmem:[#allocation5 + $0x2e8] ss:$16 sps:$4 sm:$0xff]  }
  0x7d   :  { %1512 = vmatprep.subr.bf16.mxu1 %v3090_v56  ;;  %v3175_v56 = vld [vmem:[#allocation5 + $0x32c] ss:$16 sps:$4 sm:$0xff]  }
  0x7e   :  { %1343 = vmatpush1.bf16.msra.mxu0 %v3091_v57  ;;  %v3170_v57 = vld [vmem:[#allocation5 + $0x340] ss:$16 sps:$4 sm:$0xff]  }
  0x7f   :  { %1344 = vmatprep.subr.bf16.mxu0 %v3092_v59  ;;  %v3178_v59 = vld [vmem:[#allocation5 + $0x364] ss:$16 sps:$4 sm:$0xff]  }
  0x80   :  { %1513 = vmatpush1.bf16.msra.mxu1 %v3088_v58  ;;  %v3173_v58 = vld [vmem:[#allocation5 + $0x328] ss:$16 sps:$4 sm:$0xff]  }
  0x81   :  { %1514 = vmatprep.subr.bf16.mxu1 %v3096_v60  ;;  %v3181_v60 = vld [vmem:[#allocation5 + $0x34c] ss:$16 sps:$4 sm:$0xff]  }
  0x82   :  { %1345 = vmatpush1.bf16.msra.mxu0 %v3097_v61  ;;  %v3176_v61 = vld [vmem:[#allocation5 + $0x360] ss:$16 sps:$4 sm:$0xff]  }
  0x83   :  { %1346 = vmatprep.subr.bf16.mxu0 %v3098_v63  ;;  %v3184_v63 = vld [vmem:[#allocation5 + $0x384] ss:$16 sps:$4 sm:$0xff]  }
  0x84   :  { %1515 = vmatpush1.bf16.msra.mxu1 %v3094_v62  ;;  %v3179_v62 = vld [vmem:[#allocation5 + $0x348] ss:$16 sps:$4 sm:$0xff]  }
  0x85   :  { %1516 = vmatprep.subr.bf16.mxu1 %v3102_v1  ;;  %v3187_v1 = vld [vmem:[#allocation5 + $0x36c] ss:$16 sps:$4 sm:$0xff]  }
  0x86   :  { %1347 = vmatpush1.bf16.msra.mxu0 %v3103_v2  ;;  %v3182_v2 = vld [vmem:[#allocation5 + $0x380] ss:$16 sps:$4 sm:$0xff]  }
  0x87   :  { %1348 = vmatprep.subr.bf16.mxu0 %v3104_v4  ;;  %v3190_v4 = vld [vmem:[#allocation5 + $0x3a4] ss:$16 sps:$4 sm:$0xff]  }
  0x88   :  { %1517 = vmatpush1.bf16.msra.mxu1 %v3100_v3  ;;  %v3185_v3 = vld [vmem:[#allocation5 + $0x368] ss:$16 sps:$4 sm:$0xff]  }
  0x89   :  { %1518 = vmatprep.subr.bf16.mxu1 %v3108_v5  ;;  %v3193_v5 = vld [vmem:[#allocation5 + $0x38c] ss:$16 sps:$4 sm:$0xff]  }
  0x8a   :  { %1349 = vmatpush1.bf16.msra.mxu0 %v3109_v6  ;;  %v3188_v6 = vld [vmem:[#allocation5 + $0x3a0] ss:$16 sps:$4 sm:$0xff]  }
  0x8b   :  { %1361 = vmatprep.subr.bf16.mxu0 %v3112_v10  ;;  %v3194_v10 = vld [vmem:[#allocation5 + $0x3c0] ss:$16 sps:$4 sm:$0xff]  }
  0x8c   :  { %1519 = vmatpush1.bf16.msra.mxu1 %v3106_v9  ;;  %v3199_v9 = vld [vmem:[#allocation5 + $0x3ac] ss:$16 sps:$4 sm:$0xff]  }
  0x8d   :  { %1520 = vmatprep.subr.bf16.mxu1 %v3115_v12  ;;  %1351 = vmatmul.mubr.bf16.vlgmr.msra.gmra.mrb[0].mxu0 %v109_v13  ;;  %v3197_v12 = vld [vmem:[#allocation5 + $0x3a8] ss:$16 sps:$4 sm:$0xff]  }
  0x8e   :  { %1362 = vmatpush1.bf16.msra.mxu0 %v3110_v14  ;;  %1393 = vmatprep.mubr.bf16.mxu0 %v112_v42  ;;  %v3205_v14 = vld [vmem:[#allocation5 + $0x3cc] ss:$16 sps:$4 sm:$0xff]  }
  0x8f   :  { %1363 = vmatprep.subr.bf16.mxu0 %v3118_v16  ;;  %v97_v16 = vld [vmem:[#allocation2 + $0x10] sm:$0xff] }
  0x90   :  { %1521 = vmatpush1.bf16.msra.mxu1 %v3113_v15  ;;  %v3200_v15 = vld [vmem:[#allocation5 + $0x3e0] ss:$16 sps:$4 sm:$0xff]  }
  0x91   :  { %1533 = vmatprep.subr.bf16.mxu1 %v3121_v17  ;;  %v104_v17 = vld [vmem:[#allocation2 + $0x48] sm:$0xff] }
  0x92   :  { %1364 = vmatpush1.bf16.msra.mxu0 %v3116_v18  ;;  %v3203_v18 = vld [vmem:[#allocation5 + $0x3c8] ss:$16 sps:$4 sm:$0xff]  }
  0x93   :  { %1523 = vmatmul.mubr.bf16.vlgmr.msra.gmra.mrb[4].mxu1 %v109_v13  ;;  %1365 = vmatprep.subr.bf16.mxu0 %v3124_v20  ;;  %v3202_v13 = vld [vmem:[#allocation5 + $0x3e4] ss:$16 sps:$4 sm:$0xff]   ;;  %v3211_v20 = vld [vmem:[#allocation5 + $0x3ec] ss:$16 sps:$4 sm:$0xff]  }
  0x94   :  { %1534 = vmatpush1.bf16.msra.mxu1 %v3119_v19  ;;  %1565 = vmatprep.mubr.bf16.mxu1 %v112_v42  ;;  %v3208_v19 = vld [vmem:[#allocation5 + $0x404] ss:$16 sps:$4 sm:$0xff]   ;;  %v3233_v42 = vld [vmem:[#allocation5 + $0x468] ss:$16 sps:$4 sm:$0xff]  }
  0x95   :  { %1535 = vmatprep.subr.bf16.mxu1 %v3127_v21  ;;  %v111_v21 = vpack.c.bf16 %v104_v17, %v97_v16  ;;  %v3287_v16 = vld [vmem:[#allocation5 + $0x588] ss:$16 sps:$4 sm:$0xff]   ;;  %v3292_v17 = vld [vmem:[#allocation5 + $0x5c4] ss:$16 sps:$4 sm:$0xff]  }
  0x96   :  { %1366 = vmatpush1.bf16.msra.mxu0 %v3122_v22  ;;  %v3206_v22 = vld [vmem:[#allocation5 + $0x400] ss:$16 sps:$4 sm:$0xff]  }
  0x97   :  { %1367 = vmatprep.subr.bf16.mxu0 %v3130_v24  ;;  %v3214_v24 = vld [vmem:[#allocation5 + $0x424] ss:$16 sps:$4 sm:$0xff]  }
  0x98   :  { %1536 = vmatpush1.bf16.msra.mxu1 %v3125_v23  ;;  %v3209_v23 = vld [vmem:[#allocation5 + $0x3e8] ss:$16 sps:$4 sm:$0xff]  }
  0x99   :  { %1537 = vmatprep.subr.bf16.mxu1 %v3133_v25  ;;  %v3217_v25 = vld [vmem:[#allocation5 + $0x40c] ss:$16 sps:$4 sm:$0xff]  }
  0x9a   :  { %1368 = vmatpush1.bf16.msra.mxu0 %v3128_v26  ;;  %v100_v26 = vld [vmem:[#allocation2 + $0x28] sm:$0xff] }
  0x9b   :  { %1369 = vmatprep.subr.bf16.mxu0 %v3136_v28  ;;  %v3212_v28 = vld [vmem:[#allocation5 + $0x420] ss:$16 sps:$4 sm:$0xff]  }
  0x9c   :  { %1538 = vmatpush1.bf16.msra.mxu1 %v3131_v27  ;;  %v107_v27 = vld [vmem:[#allocation2 + $0x60] sm:$0xff] }
  0x9d   :  { %1539 = vmatprep.subr.bf16.mxu1 %v3139_v29  ;;  %v114_v29 = vpack.c.bf16 %v107_v27, %v100_v26  ;;  %v3299_v26 = vld [vmem:[#allocation5 + $0x5c8] ss:$16 sps:$4 sm:$0xff]   ;;  %v3310_v27 = vld [vmem:[#allocation7 + $0x4] ss:$8 sps:$4 sm:$0xff]  }
  0x9e   :  { %1370 = vmatpush1.bf16.msra.mxu0 %v3134_v30  ;;  %v3215_v30 = vld [vmem:[#allocation5 + $0x408] ss:$16 sps:$4 sm:$0xff]  }
  0x9f   :  { %1371 = vmatprep.subr.bf16.mxu0 %v3142_v32  ;;  %v3223_v32 = vld [vmem:[#allocation5 + $0x42c] ss:$16 sps:$4 sm:$0xff]  }
  0xa0   :  { %1540 = vmatpush1.bf16.msra.mxu1 %v3137_v31  ;;  %v3220_v31 = vld [vmem:[#allocation5 + $0x444] ss:$16 sps:$4 sm:$0xff]  }
  0xa1   :  { %1541 = vmatprep.subr.bf16.mxu1 %v3145_v33  ;;  %v3218_v33 = vld [vmem:[#allocation5 + $0x440] ss:$16 sps:$4 sm:$0xff]  }
  0xa2   :  { %1372 = vmatpush1.bf16.msra.mxu0 %v3140_v34  ;;  %v3221_v34 = vld [vmem:[#allocation5 + $0x428] ss:$16 sps:$4 sm:$0xff]  }
  0xa3   :  { %1373 = vmatprep.subr.bf16.mxu0 %v3148_v36  ;;  %v3229_v36 = vld [vmem:[#allocation5 + $0x44c] ss:$16 sps:$4 sm:$0xff]  }
  0xa4   :  { %1542 = vmatpush1.bf16.msra.mxu1 %v3143_v35  ;;  %v3226_v35 = vld [vmem:[#allocation5 + $0x464] ss:$16 sps:$4 sm:$0xff]  }
  0xa5   :  { %1543 = vmatprep.subr.bf16.mxu1 %v3151_v37  ;;  %v3224_v37 = vld [vmem:[#allocation5 + $0x460] ss:$16 sps:$4 sm:$0xff]  }
  0xa6   :  { %1374 = vmatpush1.bf16.msra.mxu0 %v3146_v38  ;;  %v3227_v38 = vld [vmem:[#allocation5 + $0x448] ss:$16 sps:$4 sm:$0xff]  }
  0xa7   :  { %1375 = vmatprep.subr.bf16.mxu0 %v3154_v43  ;;  %v3238_v43 = vld [vmem:[#allocation5 + $0x4a4] ss:$16 sps:$4 sm:$0xff]  }
  0xa8   :  { %1544 = vmatpush1.bf16.msra.mxu1 %v3149_v41  ;;  %v3230_v41 = vld [vmem:[#allocation5 + $0x480] ss:$16 sps:$4 sm:$0xff]  }
  0xa9   :  { %1545 = vmatprep.subr.bf16.mxu1 %v3157_v44  ;;  %v3241_v44 = vld [vmem:[#allocation5 + $0x48c] ss:$16 sps:$4 sm:$0xff]  }
  0xaa   :  { %1376 = vmatpush1.bf16.msra.mxu0 %v3152_v45  ;;  %v3236_v45 = vld [vmem:[#allocation5 + $0x4a0] ss:$16 sps:$4 sm:$0xff]  }
  0xab   :  { %1377 = vmatprep.subr.bf16.mxu0 %v3160_v47  ;;  %v3244_v47 = vld [vmem:[#allocation5 + $0x4c4] ss:$16 sps:$4 sm:$0xff]  }
  0xac   :  { %1546 = vmatpush1.bf16.msra.mxu1 %v3155_v46  ;;  %v3239_v46 = vld [vmem:[#allocation5 + $0x488] ss:$16 sps:$4 sm:$0xff]  }
  0xad   :  { %1547 = vmatprep.subr.bf16.mxu1 %v3163_v48  ;;  %v3247_v48 = vld [vmem:[#allocation5 + $0x4ac] ss:$16 sps:$4 sm:$0xff]  }
  0xae   :  { %1378 = vmatpush1.bf16.msra.mxu0 %v3158_v49  ;;  %v3242_v49 = vld [vmem:[#allocation5 + $0x4c0] ss:$16 sps:$4 sm:$0xff]  }
  0xaf   :  { %1379 = vmatprep.subr.bf16.mxu0 %v3166_v51  ;;  %v3250_v51 = vld [vmem:[#allocation5 + $0x4e4] ss:$16 sps:$4 sm:$0xff]  }
  0xb0   :  { %1548 = vmatpush1.bf16.msra.mxu1 %v3161_v50  ;;  %v3245_v50 = vld [vmem:[#allocation5 + $0x4a8] ss:$16 sps:$4 sm:$0xff]  }
  0xb1   :  { %1549 = vmatprep.subr.bf16.mxu1 %v3169_v52  ;;  %v3253_v52 = vld [vmem:[#allocation5 + $0x4cc] ss:$16 sps:$4 sm:$0xff]  }
  0xb2   :  { %1380 = vmatpush1.bf16.msra.mxu0 %v3164_v53  ;;  %v3248_v53 = vld [vmem:[#allocation5 + $0x4e0] ss:$16 sps:$4 sm:$0xff]  }
  0xb3   :  { %1381 = vmatprep.subr.bf16.mxu0 %v3172_v55  ;;  %v3256_v55 = vld [vmem:[#allocation5 + $0x504] ss:$16 sps:$4 sm:$0xff]  }
  0xb4   :  { %1550 = vmatpush1.bf16.msra.mxu1 %v3167_v54  ;;  %v3251_v54 = vld [vmem:[#allocation5 + $0x4c8] ss:$16 sps:$4 sm:$0xff]  }
  0xb5   :  { %1551 = vmatprep.subr.bf16.mxu1 %v3175_v56  ;;  %v3259_v56 = vld [vmem:[#allocation5 + $0x4ec] ss:$16 sps:$4 sm:$0xff]  }
  0xb6   :  { %1382 = vmatpush1.bf16.msra.mxu0 %v3170_v57  ;;  %v3254_v57 = vld [vmem:[#allocation5 + $0x500] ss:$16 sps:$4 sm:$0xff]  }
  0xb7   :  { %1383 = vmatprep.subr.bf16.mxu0 %v3178_v59  ;;  %v3262_v59 = vld [vmem:[#allocation5 + $0x524] ss:$16 sps:$4 sm:$0xff]  }
  0xb8   :  { %1552 = vmatpush1.bf16.msra.mxu1 %v3173_v58  ;;  %v3257_v58 = vld [vmem:[#allocation5 + $0x4e8] ss:$16 sps:$4 sm:$0xff]  }
  0xb9   :  { %1553 = vmatprep.subr.bf16.mxu1 %v3181_v60  ;;  %v3265_v60 = vld [vmem:[#allocation5 + $0x50c] ss:$16 sps:$4 sm:$0xff]  }
  0xba   :  { %1384 = vmatpush1.bf16.msra.mxu0 %v3176_v61  ;;  %v3260_v61 = vld [vmem:[#allocation5 + $0x520] ss:$16 sps:$4 sm:$0xff]  }
  0xbb   :  { %1385 = vmatprep.subr.bf16.mxu0 %v3184_v63  ;;  %v3268_v63 = vld [vmem:[#allocation5 + $0x544] ss:$16 sps:$4 sm:$0xff]  }
  0xbc   :  { %1554 = vmatpush1.bf16.msra.mxu1 %v3179_v62  ;;  %v3263_v62 = vld [vmem:[#allocation5 + $0x508] ss:$16 sps:$4 sm:$0xff]  }
  0xbd   :  { %1555 = vmatprep.subr.bf16.mxu1 %v3187_v1  ;;  %v3271_v1 = vld [vmem:[#allocation5 + $0x52c] ss:$16 sps:$4 sm:$0xff]  }
  0xbe   :  { %1386 = vmatpush1.bf16.msra.mxu0 %v3182_v2  ;;  %v3266_v2 = vld [vmem:[#allocation5 + $0x540] ss:$16 sps:$4 sm:$0xff]  }
  0xbf   :  { %1387 = vmatprep.subr.bf16.mxu0 %v3190_v4  ;;  %v3274_v4 = vld [vmem:[#allocation5 + $0x564] ss:$16 sps:$4 sm:$0xff]  }
  0xc0   :  { %1556 = vmatpush1.bf16.msra.mxu1 %v3185_v3  ;;  %v3269_v3 = vld [vmem:[#allocation5 + $0x528] ss:$16 sps:$4 sm:$0xff]  }
  0xc1   :  { %1557 = vmatprep.subr.bf16.mxu1 %v3193_v5  ;;  %v3277_v5 = vld [vmem:[#allocation5 + $0x54c] ss:$16 sps:$4 sm:$0xff]  }
  0xc2   :  { %1388 = vmatpush1.bf16.msra.mxu0 %v3188_v6  ;;  %v3272_v6 = vld [vmem:[#allocation5 + $0x560] ss:$16 sps:$4 sm:$0xff]  }
  0xc3   :  { %1389 = vmatprep.subr.bf16.mxu0 %v3196_v8  ;;  %v3280_v8 = vld [vmem:[#allocation5 + $0x584] ss:$16 sps:$4 sm:$0xff]  }
  0xc4   :  { %1558 = vmatpush1.bf16.msra.mxu1 %v3191_v7  ;;  %v3275_v7 = vld [vmem:[#allocation5 + $0x548] ss:$16 sps:$4 sm:$0xff]  }
  0xc5   :  { %1559 = vmatprep.subr.bf16.mxu1 %v3199_v9  ;;  %v3283_v9 = vld [vmem:[#allocation5 + $0x56c] ss:$16 sps:$4 sm:$0xff]  }
  0xc6   :  { %1390 = vmatpush1.bf16.msra.mxu0 %v3194_v10  ;;  %v3278_v10 = vld [vmem:[#allocation5 + $0x580] ss:$16 sps:$4 sm:$0xff]  }
  0xc7   :  { %1391 = vmatprep.subr.bf16.mxu0 %v3202_v13  ;;  %v3286_v13 = vld [vmem:[#allocation5 + $0x5a4] ss:$16 sps:$4 sm:$0xff]  }
  0xc8   :  { %1560 = vmatpush1.bf16.msra.mxu1 %v3197_v12  ;;  %v3281_v12 = vld [vmem:[#allocation5 + $0x568] ss:$16 sps:$4 sm:$0xff]  }
  0xc9   :  { %1561 = vmatprep.subr.bf16.mxu1 %v3205_v14  ;;  %v3289_v14 = vld [vmem:[#allocation5 + $0x58c] ss:$16 sps:$4 sm:$0xff]  }
  0xca   :  { %1392 = vmatpush1.bf16.msra.mxu0 %v3200_v15  ;;  %v3284_v15 = vld [vmem:[#allocation5 + $0x5a0] ss:$16 sps:$4 sm:$0xff]  }
  0xcb   :  { %1404 = vmatprep.subr.bf16.mxu0 %v3208_v19  ;;  %v3290_v19 = vld [vmem:[#allocation5 + $0x5c0] ss:$16 sps:$4 sm:$0xff]  }
  0xcc   :  { %1562 = vmatpush1.bf16.msra.mxu1 %v3203_v18  ;;  %v3295_v18 = vld [vmem:[#allocation5 + $0x5ac] ss:$16 sps:$4 sm:$0xff]  }
  0xcd   :  { %1563 = vmatprep.subr.bf16.mxu1 %v3211_v20  ;;  %1394 = vmatmul.mubr.bf16.vlgmr.msra.gmra.mrb[0].mxu0 %v111_v21  ;;  %v3293_v20 = vld [vmem:[#allocation5 + $0x5a8] ss:$16 sps:$4 sm:$0xff]  }
  0xce   :  { %1405 = vmatpush1.bf16.msra.mxu0 %v3206_v22  ;;  %1436 = vmatprep.mubr.bf16.mxu0 %v114_v29  ;;  %v3301_v22 = vld [vmem:[#allocation5 + $0x5cc] ss:$16 sps:$4 sm:$0xff]  }
  0xcf   :  { %1406 = vmatprep.subr.bf16.mxu0 %v3214_v24  ;;  %v99_v24 = vld [vmem:[#allocation2 + $0x20] sm:$0xff] }
  0xd0   :  { %1564 = vmatpush1.bf16.msra.mxu1 %v3209_v23  ;;  %v3296_v23 = vld [vmem:[#allocation5 + $0x5e0] ss:$16 sps:$4 sm:$0xff]  }
  0xd1   :  { %1576 = vmatprep.subr.bf16.mxu1 %v3217_v25  ;;  %v106_v25 = vld [vmem:[#allocation2 + $0x58] sm:$0xff] }
  0xd2   :  { %1407 = vmatpush1.bf16.msra.mxu0 %v3212_v28  ;;  %v3304_v28 = vld [vmem:[#allocation5 + $0x5ec] ss:$16 sps:$4 sm:$0xff]  }
  0xd3   :  { %1566 = vmatmul.mubr.bf16.vlgmr.msra.gmra.mrb[4].mxu1 %v111_v21  ;;  %1408 = vmatprep.subr.bf16.mxu0 %v3220_v31  ;;  %v3298_v21 = vld [vmem:[#allocation5 + $0x5e4] ss:$16 sps:$4 sm:$0xff]   ;;  %v3302_v31 = vld [vmem:[#allocation5 + $0x5e8] ss:$16 sps:$4 sm:$0xff]  }
  0xd4   :  { %1577 = vmatpush1.bf16.msra.mxu1 %v3215_v30  ;;  %1608 = vmatprep.mubr.bf16.mxu1 %v114_v29  ;;  %v113_v29 = vpack.c.bf16 %v106_v25, %v99_v24  ;;  %v3308_v30 = vld [vmem:[#allocation7] ss:$8 sps:$4 sm:$0xff]  }
  0xd5   :  { %1578 = vmatprep.subr.bf16.mxu1 %v3223_v32  ;;  %v3313_v32 = vld [vmem:[#allocation7 + $0x14] ss:$8 sps:$4 sm:$0xff]  }
  0xd6   :  { %1409 = vmatpush1.bf16.msra.mxu0 %v3218_v33  ;;  %v3307_v33 = vld [vmem:[#allocation5 + $0x60c] ss:$16 sps:$4 sm:$0xff]  }
  0xd7   :  { %1410 = vmatprep.subr.bf16.mxu0 %v3226_v35  ;;  %v3305_v35 = vld [vmem:[#allocation5 + $0x608] ss:$16 sps:$4 sm:$0xff]  }
  0xd8   :  { %1579 = vmatpush1.bf16.msra.mxu1 %v3221_v34  ;;  %v3311_v34 = vld [vmem:[#allocation7 + $0x10] ss:$8 sps:$4 sm:$0xff]  }
  0xd9   :  { %1580 = vmatprep.subr.bf16.mxu1 %v3229_v36  ;;  %v3316_v36 = vld [vmem:[#allocation7 + $0x24] ss:$8 sps:$4 sm:$0xff]  }
  0xda   :  { %1411 = vmatpush1.bf16.msra.mxu0 %v3224_v37  ;;  %v3314_v37 = vld [vmem:[#allocation7 + $0x20] ss:$8 sps:$4 sm:$0xff]  }
  0xdb   :  { %1412 = vmatprep.subr.bf16.mxu0 %v3232_v39  ;;  %v3317_v39 = vld [vmem:[#allocation7 + $0x30] ss:$8 sps:$4 sm:$0xff]  }
  0xdc   :  { %1581 = vmatpush1.bf16.msra.mxu1 %v3227_v38  ;;  %v3319_v38 = vld [vmem:[#allocation7 + $0x34] ss:$8 sps:$4 sm:$0xff]  }
  0xdd   :  { %1582 = vmatprep.subr.bf16.mxu1 %v3235_v40  ;;  %v3322_v40 = vld [vmem:[#allocation7 + $0x44] ss:$8 sps:$4 sm:$0xff]  }
  0xde   :  { %1413 = vmatpush1.bf16.msra.mxu0 %v3230_v41  ;;  %v3320_v41 = vld [vmem:[#allocation7 + $0x40] ss:$8 sps:$4 sm:$0xff]  }
  0xdf   :  { %1414 = vmatprep.subr.bf16.mxu0 %v3238_v43  ;;  %v3323_v43 = vld [vmem:[#allocation7 + $0x50] ss:$8 sps:$4 sm:$0xff]  }
  0xe0   :  { %1583 = vmatpush1.bf16.msra.mxu1 %v3233_v42  ;;  %v3325_v42 = vld [vmem:[#allocation7 + $0x54] ss:$8 sps:$4 sm:$0xff]  }
  0xe1   :  { %1584 = vmatprep.subr.bf16.mxu1 %v3241_v44  ;;  %v3328_v44 = vld [vmem:[#allocation7 + $0x64] ss:$8 sps:$4 sm:$0xff]  }
  0xe2   :  { %1415 = vmatpush1.bf16.msra.mxu0 %v3236_v45  ;;  %v3326_v45 = vld [vmem:[#allocation7 + $0x60] ss:$8 sps:$4 sm:$0xff]  }
  0xe3   :  { %1416 = vmatprep.subr.bf16.mxu0 %v3244_v47 }
  0xe4   :  { %1585 = vmatpush1.bf16.msra.mxu1 %v3239_v46 }
  0xe5   :  { %1586 = vmatprep.subr.bf16.mxu1 %v3247_v48  ;;  %v3329_v48 = vld [vmem:[#allocation7 + $0x70] ss:$8 sps:$4 sm:$0xff]  }
  0xe6   :  { %1417 = vmatpush1.bf16.msra.mxu0 %v3242_v49 }
  0xe7   :  { %1418 = vmatprep.subr.bf16.mxu0 %v3250_v51 }
  0xe8   :  { %1587 = vmatpush1.bf16.msra.mxu1 %v3245_v50  ;;  %v3334_v50 = vld [vmem:[#allocation7 + $0x84] ss:$8 sps:$4 sm:$0xff]  }
  0xe9   :  { %1588 = vmatprep.subr.bf16.mxu1 %v3253_v52  ;;  %v3337_v52 = vld [vmem:[#allocation7 + $0x94] ss:$8 sps:$4 sm:$0xff]  }
  0xea   :  { %1419 = vmatpush1.bf16.msra.mxu0 %v3248_v53  ;;  %v3335_v53 = vld [vmem:[#allocation7 + $0x90] ss:$8 sps:$4 sm:$0xff]  }
  0xeb   :  { %1420 = vmatprep.subr.bf16.mxu0 %v3256_v55  ;;  %v3338_v55 = vld [vmem:[#allocation7 + $0xa0] ss:$8 sps:$4 sm:$0xff]  }
  0xec   :  { %1589 = vmatpush1.bf16.msra.mxu1 %v3251_v54  ;;  %v3340_v54 = vld [vmem:[#allocation7 + $0xa4] ss:$8 sps:$4 sm:$0xff]  }
  0xed   :  { %1590 = vmatprep.subr.bf16.mxu1 %v3259_v56  ;;  %v3343_v56 = vld [vmem:[#allocation7 + $0xb4] ss:$8 sps:$4 sm:$0xff]  }
  0xee   :  { %1421 = vmatpush1.bf16.msra.mxu0 %v3254_v57  ;;  %v3341_v57 = vld [vmem:[#allocation7 + $0xb0] ss:$8 sps:$4 sm:$0xff]  }
  0xef   :  { %1422 = vmatprep.subr.bf16.mxu0 %v3262_v59  ;;  %v3344_v59 = vld [vmem:[#allocation7 + $0xc0] ss:$8 sps:$4 sm:$0xff]  }
  0xf0   :  { %1591 = vmatpush1.bf16.msra.mxu1 %v3257_v58  ;;  %v3346_v58 = vld [vmem:[#allocation7 + $0xc4] ss:$8 sps:$4 sm:$0xff]  }
  0xf1   :  { %1592 = vmatprep.subr.bf16.mxu1 %v3265_v60  ;;  %v3349_v60 = vld [vmem:[#allocation7 + $0xd4] ss:$8 sps:$4 sm:$0xff]  }
  0xf2   :  { %1423 = vmatpush1.bf16.msra.mxu0 %v3260_v61  ;;  %v3347_v61 = vld [vmem:[#allocation7 + $0xd0] ss:$8 sps:$4 sm:$0xff]  }
  0xf3   :  { %1424 = vmatprep.subr.bf16.mxu0 %v3268_v63  ;;  %v3350_v63 = vld [vmem:[#allocation7 + $0xe0] ss:$8 sps:$4 sm:$0xff]  }
  0xf4   :  { %1593 = vmatpush1.bf16.msra.mxu1 %v3263_v62  ;;  %v3352_v62 = vld [vmem:[#allocation7 + $0xe4] ss:$8 sps:$4 sm:$0xff]  }
  0xf5   :  { %1594 = vmatprep.subr.bf16.mxu1 %v3271_v1  ;;  %v3355_v1 = vld [vmem:[#allocation7 + $0xf4] ss:$8 sps:$4 sm:$0xff]  }
  0xf6   :  { %1425 = vmatpush1.bf16.msra.mxu0 %v3266_v2  ;;  %v3353_v2 = vld [vmem:[#allocation7 + $0xf0] ss:$8 sps:$4 sm:$0xff]  }
  0xf7   :  { %1426 = vmatprep.subr.bf16.mxu0 %v3274_v4  ;;  %v3404_v4 = vld [vmem:[#allocation8 + $0x40] sm:$0xff]  }
  0xf8   :  { %1595 = vmatpush1.bf16.msra.mxu1 %v3269_v3  ;;  %v3358_v3 = vld [vmem:[#allocation7 + $0x104] ss:$8 sps:$4 sm:$0xff]  }
  0xf9   :  { %1596 = vmatprep.subr.bf16.mxu1 %v3277_v5  ;;  %v3405_v5 = vld [vmem:[#allocation8] sm:$0xff]  }
  0xfa   :  { %1427 = vmatpush1.bf16.msra.mxu0 %v3272_v6  ;;  %v3406_v6 = vld [vmem:[#allocation8 + $0x48] sm:$0xff]  }
  0xfb   :  { %1428 = vmatprep.subr.bf16.mxu0 %v3280_v8  ;;  %v3408_v8 = vld [vmem:[#allocation8 + $0x50] sm:$0xff]  }
  0xfc   :  { %1597 = vmatpush1.bf16.msra.mxu1 %v3275_v7  ;;  %v3407_v7 = vld [vmem:[#allocation8 + $0x8] sm:$0xff]  }
  0xfd   :  { %1598 = vmatprep.subr.bf16.mxu1 %v3283_v9  ;;  %v3409_v9 = vld [vmem:[#allocation8 + $0x10] sm:$0xff]  }
  0xfe   :  { %1429 = vmatpush1.bf16.msra.mxu0 %v3278_v10  ;;  %v3410_v10 = vld [vmem:[#allocation8 + $0x58] sm:$0xff]  }
  0xff   :  { %1430 = vmatprep.subr.bf16.mxu0 %v3286_v13  ;;  %v3412_v13 = vld [vmem:[#allocation8 + $0x60] sm:$0xff]  }
 0x100   :  { %1599 = vmatpush1.bf16.msra.mxu1 %v3281_v12  ;;  %v3411_v12 = vld [vmem:[#allocation8 + $0x18] sm:$0xff]  }
 0x101   :  { %1600 = vmatprep.subr.bf16.mxu1 %v3289_v14  ;;  %v3413_v14 = vld [vmem:[#allocation8 + $0x20] sm:$0xff]  }
 0x102   :  { %1431 = vmatpush1.bf16.msra.mxu0 %v3284_v15  ;;  %v3414_v15 = vld [vmem:[#allocation8 + $0x68] sm:$0xff]  }
 0x103   :  { %1432 = vmatprep.subr.bf16.mxu0 %v3292_v17 }
 0x104   :  { %1601 = vmatpush1.bf16.msra.mxu1 %v3287_v16  ;;  %v314_v16 = vlaneseq }
 0x105   :  { %1602 = vmatprep.subr.bf16.mxu1 %v3295_v18 }
 0x106   :  { %1433 = vmatpush1.bf16.msra.mxu0 %v3290_v19  ;;  %v3701_v17 = vshrl.u32 %v314_v16, 7  ;;  %v312_v19 = vld [vmem:[%s3803_s2] sm:$0xf]  ;;  %v3391_v16 = vld [vmem:[#allocation7 + $0x1b4] ss:$8 sps:$4 sm:$0xff]  }
 0x107   :  { %1434 = vmatprep.subr.bf16.mxu0 %v3298_v21 }
 0x108   :  { %1603 = vmatpush1.bf16.msra.mxu1 %v3293_v20  ;;  %v316_v18 = vsub.s32 0, %v3701_v17  ;;  %v320_v20 = vsub.s32 1, %v3701_v17 }
 0x109   :  { %1604 = vmatprep.subr.bf16.mxu1 %v3301_v22 }
 0x10a   :  { %1435 = vmatpush1.bf16.msra.mxu0 %v3296_v23  ;;  %v317_v21 = vrot.slane %v312_v19, %v316_v18  ;;  %v321_v22 = vrot.slane %v312_v19, %v320_v20 }
 0x10b   :  { %2070 = vmatprep.subr.bf16.mxu0 %v3310_v27 }
 0x10c   :  { %1605 = vmatpush1.bf16.msra.mxu1 %v3299_v26 }
 0x10d   :  { %1606 = vmatprep.subr.bf16.mxu1 %v3304_v28  ;;  %1437 = vmatmul.mubr.bf16.vlgmr.msra.gmra.mrb[0].mxu0 %v113_v29 }
 0x10e   :  { %2071 = vmatpush1.bf16.msra.mxu0 %v3308_v30 }
 0x10f   :  { %2072 = vmatprep.subr.bf16.mxu0 %v3313_v32 }
 0x110   :  { %1607 = vmatpush1.bf16.msra.mxu1 %v3302_v31 }
 0x111   :  { %1619 = vmatprep.subr.bf16.mxu1 %v3307_v33 }
 0x112   :  { %2073 = vmatpush1.bf16.msra.mxu0 %v3311_v34 }
 0x113   :  { %1609 = vmatmul.mubr.bf16.vlgmr.msra.gmra.mrb[4].mxu1 %v113_v29  ;;  %2074 = vmatprep.subr.bf16.mxu0 %v3316_v36 }
 0x114   :  { %1620 = vmatpush1.bf16.msra.mxu1 %v3305_v35  ;;  %1651 = vmatprep.mubr.bf16.mxu1 %v3570_v0  ;;  %v3331_v0 = vld [vmem:[#allocation7 + $0x74] ss:$8 sps:$4 sm:$0xff]  }
 0x115   :  { %2890 = vmatprep.subr.bf16.mxu1 %v3404_v4  ;;  %v3371_v4 = vld [vmem:[#allocation7 + $0x150] ss:$8 sps:$4 sm:$0xff]  }
 0x116   :  { %2075 = vmatpush1.bf16.msra.mxu0 %v3314_v37 }
 0x117   :  { %2076 = vmatprep.subr.bf16.mxu0 %v3319_v38 }
 0x11a   :  { %2077 = vmatpush1.bf16.msra.mxu0 %v3317_v39 }
 0x11b   :  { %2078 = vmatprep.subr.bf16.mxu0 %v3322_v40 }
 0x11e   :  { %2079 = vmatpush1.bf16.msra.mxu0 %v3320_v41  ;;  %v3356_v41 = vld [vmem:[#allocation7 + $0x100] ss:$8 sps:$4 sm:$0xff]  }
 0x11f   :  { %2784 = vmatmul.mubr.msk.bf16.vlgmr.msra.gmra.mrb[4].mxu1 %vm1314_vm0, %v3686_v11  ;;  %2080 = vmatprep.subr.bf16.mxu0 %v3325_v42  ;;  %v3332_v11 = vld [vmem:[#allocation7 + $0x80] ss:$8 sps:$4 sm:$0xff]   ;;  %v324_v42 = vsub.s32 2, %v3701_v17 }
 0x120   :  { %2891 = vmatpush3.bf16.msra.mxu1 %v3405_v5  ;;  %v3376_v5 = vld [vmem:[#allocation7 + $0x164] ss:$8 sps:$4 sm:$0xff]  }
 0x121   :  { %2892 = vmatprep.subr.bf16.mxu1 %v3406_v6  ;;  %v3374_v6 = vld [vmem:[#allocation7 + $0x160] ss:$8 sps:$4 sm:$0xff]  }
 0x122   :  { %2081 = vmatpush1.bf16.msra.mxu0 %v3323_v43  ;;  %v3361_v43 = vld [vmem:[#allocation7 + $0x114] ss:$8 sps:$4 sm:$0xff]  }
 0x123   :  { %2082 = vmatprep.subr.bf16.mxu0 %v3328_v44  ;;  %v328_v44 = vsub.s32 3, %v3701_v17  ;;  %v3421_v17 = vld [vmem:[%s3808_s7 + $0x8] sm:$0xff]  }
 0x124   :  { %2893 = vmatpush3.bf16.msra.mxu1 %v3407_v7  ;;  %v3379_v7 = vld [vmem:[#allocation7 + $0x174] ss:$8 sps:$4 sm:$0xff]  }
 0x125   :  { %2894 = vmatprep.subr.bf16.mxu1 %v3408_v8  ;;  %v3377_v8 = vld [vmem:[#allocation7 + $0x170] ss:$8 sps:$4 sm:$0xff]  }
 0x126   :  { %v3693_v46 = vpop.f32.mrb[0].mxu1  ;;  %2083 = vmatpush1.bf16.msra.mxu0 %v3326_v45  ;;  %v325_v45 = vrot.slane %v312_v19, %v324_v42 }
 0x127   :  { %v3695_v47 = vpop.f32.mrb[1].mxu1  ;;  %2084 = vmatprep.subr.bf16.mxu0 %v3331_v0  ;;  %v3359_v0 = vld [vmem:[#allocation7 + $0x110] ss:$8 sps:$4 sm:$0xff]  }
 0x128   :  { %v3697_v49 = vpop.f32.mrb[2].mxu1  ;;  %2895 = vmatpush3.bf16.msra.mxu1 %v3409_v9  ;;  %v3382_v9 = vld [vmem:[#allocation7 + $0x184] ss:$8 sps:$4 sm:$0xff]  }
 0x129   :  { %v3699_v51 = vpop.f32.mrb[3].mxu1  ;;  %2896 = vmatprep.subr.bf16.mxu1 %v3410_v10  ;;  %v3380_v10 = vld [vmem:[#allocation7 + $0x180] ss:$8 sps:$4 sm:$0xff]  }
 0x12a   :  { %2085 = vmatpush1.bf16.msra.mxu0 %v3329_v48 }
 0x12b   :  { %2086 = vmatprep.subr.bf16.mxu0 %v3334_v50 }
 0x12c   :  { %2897 = vmatpush3.bf16.msra.mxu1 %v3411_v12  ;;  %v3385_v12 = vld [vmem:[#allocation7 + $0x194] ss:$8 sps:$4 sm:$0xff]  }
 0x12d   :  { %2898 = vmatprep.subr.bf16.mxu1 %v3412_v13  ;;  %v3383_v13 = vld [vmem:[#allocation7 + $0x190] ss:$8 sps:$4 sm:$0xff]  }
 0x12e   :  { %2087 = vmatpush1.bf16.msra.mxu0 %v3332_v11 }
 0x12f   :  { %2088 = vmatprep.subr.bf16.mxu0 %v3337_v52 }
 0x130   :  { %2899 = vmatpush3.bf16.msra.mxu1 %v3413_v14  ;;  %v3388_v14 = vld [vmem:[#allocation7 + $0x1a4] ss:$8 sps:$4 sm:$0xff]  }
 0x131   :  { %2900 = vmatprep.subr.bf16.mxu1 %v3414_v15  ;;  %v3386_v15 = vld [vmem:[#allocation7 + $0x1a0] ss:$8 sps:$4 sm:$0xff]  }
 0x132   :  { %2089 = vmatpush1.bf16.msra.mxu0 %v3335_v53  ;;  %v3367_v53 = vld [vmem:[#allocation7 + $0x134] ss:$8 sps:$4 sm:$0xff]  }
 0x133   :  { %2090 = vmatprep.subr.bf16.mxu0 %v3340_v54 }
 0x136   :  { %2091 = vmatpush1.bf16.msra.mxu0 %v3338_v55 }
 0x137   :  { %2092 = vmatprep.subr.bf16.mxu0 %v3343_v56 }
 0x13a   :  { %2093 = vmatpush1.bf16.msra.mxu0 %v3341_v57 }
 0x13b   :  { %2094 = vmatprep.subr.bf16.mxu0 %v3346_v58 }
 0x13e   :  { %2095 = vmatpush1.bf16.msra.mxu0 %v3344_v59  ;;  %v3365_v59 = vld [vmem:[#allocation7 + $0x130] ss:$8 sps:$4 sm:$0xff]  }
 0x13f   :  { %2096 = vmatprep.subr.bf16.mxu0 %v3349_v60 }
 0x142   :  { %2097 = vmatpush1.bf16.msra.mxu0 %v3347_v61 }
 0x143   :  { %2098 = vmatprep.subr.bf16.mxu0 %v3352_v62  ;;  %v3370_v62 = vld [vmem:[#allocation7 + $0x144] ss:$8 sps:$4 sm:$0xff]  }
 0x146   :  { %2099 = vmatpush1.bf16.msra.mxu0 %v3350_v63 }
 0x147   :  { %2100 = vmatprep.subr.bf16.mxu0 %v3355_v1 }
 0x14a   :  { %2101 = vmatpush1.bf16.msra.mxu0 %v3353_v2  ;;  %v3368_v2 = vld [vmem:[#allocation7 + $0x140] ss:$8 sps:$4 sm:$0xff]  }
 0x14b   :  { %2113 = vmatprep.subr.bf16.mxu0 %v3358_v3  ;;  %v3373_v3 = vld [vmem:[#allocation7 + $0x154] ss:$8 sps:$4 sm:$0xff]  }
 0x1e0   :  { %v1438_v23 = vpop.f32.mrb[0].mxu0 }
 0x1e1   :  { %v2958_v24 = vadd.f32 %v1438_v23, %v317_v21  ;;  %v1440_v25 = vpop.f32.mrb[1].mxu0  ;;  %v3397_v23 = vld [vmem:[#allocation7 + $0x1d4] ss:$8 sps:$4 sm:$0xff]  }
 0x1e2   :  { %v2960_v26 = vadd.f32 %v1440_v25, %v321_v22  ;;  %v1442_v27 = vpop.f32.mrb[2].mxu0  ;;  %v3400_v25 = vld [vmem:[#allocation7 + $0x1e4] ss:$8 sps:$4 sm:$0xff]  }
 0x1e3   :  { %v2959_v28 = vadd.f32 %v2958_v24, %v3693_v46  ;;  %v2962_v29 = vadd.f32 %v1442_v27, %v317_v21  ;;  %v1444_v30 = vpop.f32.mrb[3].mxu0  ;;  %v329_v46 = vrot.slane %v312_v19, %v328_v44  ;;  %v3389_v19 = vld [vmem:[#allocation7 + $0x1b0] ss:$8 sps:$4 sm:$0xff]   ;;  %v3394_v21 = vld [vmem:[#allocation7 + $0x1c4] ss:$8 sps:$4 sm:$0xff]  }
 0x1e4   :  { %v2961_v31 = vadd.f32 %v2960_v26, %v3695_v47  ;;  %v2964_v32 = vadd.f32 %v1444_v30, %v321_v22  ;;  %v3364_v47 = vld [vmem:[#allocation7 + $0x124] ss:$8 sps:$4 sm:$0xff]   ;;  %v3392_v22 = vld [vmem:[#allocation7 + $0x1c0] ss:$8 sps:$4 sm:$0xff]   ;;  %v3395_v24 = vld [vmem:[#allocation7 + $0x1d0] ss:$8 sps:$4 sm:$0xff]  }
 0x1e5   :  { %v2963_v33 = vadd.f32 %v2962_v29, %v3697_v49  ;;  %v1662_v35 = vmax.f32 %v2959_v28, 0.0  ;;  %v3398_v26 = vld [vmem:[#allocation7 + $0x1e0] ss:$8 sps:$4 sm:$0xff]   ;;  %v3403_v27 = vld [vmem:[#allocation7 + $0x1f4] ss:$8 sps:$4 sm:$0xff]  }
 0x1e6   :  { %v2965_v34 = vadd.f32 %v2964_v32, %v3699_v51  ;;  %v1663_v37 = vmax.f32 %v2961_v31, 0.0  ;;  %v3362_v51 = vld [vmem:[#allocation7 + $0x120] ss:$8 sps:$4 sm:$0xff]   ;;  %v3401_v28 = vld [vmem:[#allocation7 + $0x1f0] ss:$8 sps:$4 sm:$0xff]  }
 0x1e7   :  { %v1666_v36 = vmax.f32 %v2963_v33, 0.0  ;;  %v3415_v29 = vld [vmem:[#allocation8 + $0x28] sm:$0xff]   ;;  %v3416_v30 = vld [vmem:[#allocation8 + $0x70] sm:$0xff]   ;;  %v3418_v32 = vld [vmem:[#allocation8 + $0x78] sm:$0xff]  }
 0x1e8   :  { %v1667_v38 = vmax.f32 %v2965_v34, 0.0  ;;  %2901 = vmatpush3.bf16.msra.mxu1 %v3415_v29  ;;  %v3417_v31 = vld [vmem:[#allocation8 + $0x30] sm:$0xff]   ;;  %v3419_v33 = vld [vmem:[#allocation8 + $0x38] sm:$0xff]   ;;  %v3571_v34 = vmov 0.0  }
 0x1e9   :  { %v1670_v39 = vpack.c.bf16 %v1666_v36, %v1662_v35  ;;  %2902 = vmatprep.subr.bf16.mxu1 %v3416_v30  ;;  %v1738_v35 = vld [vmem:[%s3805_s4] sm:$0x3] }
 0x1ea   :  { %v1671_v40 = vpack.c.bf16 %v1667_v38, %v1663_v37  ;;  %v1743_v36 = vrot.slane %v1738_v35, %v316_v18  ;;  %v1747_v37 = vrot.slane %v1738_v35, %v320_v20  ;;  %v3420_v18 = vld [vmem:[%s3808_s7] sm:$0xff]   ;;  %v3422_v20 = vld [vmem:[%s3808_s7 + $0x10] sm:$0xff]  }
 0x1ec   :  { %2102 = vmatprep.mubr.bf16.mxu0 %v1671_v40  ;;  %2903 = vmatpush3.bf16.msra.mxu1 %v3417_v31 }
 0x1ed   :  { %2103 = vmatmul.mubr.bf16.vlgmr.msra.gmra.mrb[4].mxu0 %v1670_v39  ;;  %2904 = vmatprep.subr.bf16.mxu1 %v3418_v32 }
 0x1ee   :  { %2114 = vmatpush1.bf16.msra.mxu0 %v3356_v41 }
 0x1ef   :  { %2115 = vmatprep.subr.bf16.mxu0 %v3361_v43 }
 0x1f0   :  { %2905 = vmatpush3.bf16.msra.mxu1 %v3419_v33 }
 0x1f1   :  { %2926 = vmatprep.subr.bf16.mxu1 %v3571_v34 }
 0x1f2   :  { %v1653_v48 = vpop.f32.mrb[4].mxu1  ;;  %2116 = vmatpush1.bf16.msra.mxu0 %v3359_v0 }
 0x1f3   :  { %v2966_v49 = vadd.f32 %v1653_v48, %v325_v45  ;;  %v1655_v50 = vpop.f32.mrb[5].mxu1  ;;  %2117 = vmatprep.subr.bf16.mxu0 %v3364_v47 }
 0x1f4   :  { %v2967_v11 = vadd.f32 %v1655_v50, %v329_v46  ;;  %v1657_v52 = vpop.f32.mrb[6].mxu1 }
 0x1f5   :  { %v2968_v54 = vadd.f32 %v1657_v52, %v325_v45  ;;  %v1659_v55 = vpop.f32.mrb[7].mxu1  ;;  %v1664_v57 = vmax.f32 %v2966_v49, 0.0  ;;  %v3425_v52 = vld [vmem:[%s3808_s7 + $0x28] sm:$0xff]  }
 0x1f6   :  { %v2969_v56 = vadd.f32 %v1659_v55, %v329_v46  ;;  %2118 = vmatpush1.bf16.msra.mxu0 %v3362_v51  ;;  %v1665_v60 = vmax.f32 %v2967_v11, 0.0  ;;  %v3423_v51 = vld [vmem:[%s3808_s7 + $0x18] sm:$0xff]   ;;  %v3424_v11 = vld [vmem:[%s3808_s7 + $0x20] sm:$0xff]  }
 0x1f7   :  { %v1668_v58 = vmax.f32 %v2968_v54, 0.0  ;;  %2119 = vmatprep.subr.bf16.mxu0 %v3367_v53  ;;  %v3426_v53 = vld [vmem:[%s3808_s7 + $0x30] sm:$0xff]   ;;  %v3427_v54 = vld [vmem:[%s3808_s7 + $0x38] sm:$0xff]  }
 0x1f8   :  { %v1669_v61 = vmax.f32 %v2969_v56, 0.0  ;;  %v2849_v56 = vld [vmem:[%s3807_s6] ss:$0 sm:$0xff] }
 0x1f9   :  { %v1672_v63 = vpack.c.bf16 %v1668_v58, %v1664_v57 }
 0x1fa   :  { %v1673_v1 = vpack.c.bf16 %v1669_v61, %v1665_v60  ;;  %2120 = vmatpush1.bf16.msra.mxu0 %v3365_v59 }
 0x1fb   :  { %2121 = vmatprep.subr.bf16.mxu0 %v3370_v62 }
 0x1fc   :  { %2145 = vmatprep.mubr.bf16.mxu0 %v1673_v1 }
 0x1fe   :  { %2122 = vmatpush1.bf16.msra.mxu0 %v3368_v2 }
 0x1ff   :  { %2123 = vmatprep.subr.bf16.mxu0 %v3373_v3  ;;  %v3428_v3 = vld [vmem:[%s3810_s9] sm:$0xff]  }
 0x202   :  { %2124 = vmatpush1.bf16.msra.mxu0 %v3371_v4 }
 0x203   :  { %2125 = vmatprep.subr.bf16.mxu0 %v3376_v5  ;;  %v3429_v5 = vld [vmem:[%s3810_s9 + $0x8] sm:$0xff]  }
 0x206   :  { %2126 = vmatpush1.bf16.msra.mxu0 %v3374_v6  ;;  %v3430_v6 = vld [vmem:[%s3810_s9 + $0x10] sm:$0xff]  }
 0x207   :  { %2127 = vmatprep.subr.bf16.mxu0 %v3379_v7  ;;  %v3431_v7 = vld [vmem:[%s3810_s9 + $0x18] sm:$0xff]  }
 0x20a   :  { %2128 = vmatpush1.bf16.msra.mxu0 %v3377_v8  ;;  %v2866_v8 = vld [vmem:[%s3809_s8] ss:$0 sm:$0xff]  ;;  %s3573_s8 = smov [#allocation10]  }
 0x20b   :  { %2129 = vmatprep.subr.bf16.mxu0 %v3382_v9  ;;  %s2573_s9 = sshll.u32 %s3573_s8, 4  ;;  %s2574_s9 = int_to_ptr.vmem [resolvable:$true] %s2573_s9 }
 0x20c   :  { %p3533_p5 = scmp.lt.s32.totalorder %s2574_s9, %s2574_s9 }
 0x20e   :  { %2130 = vmatpush1.bf16.msra.mxu0 %v3380_v10 }
 0x20f   :  { %2131 = vmatprep.subr.bf16.mxu0 %v3385_v12 }
 0x212   :  { %2132 = vmatpush1.bf16.msra.mxu0 %v3383_v13 }
 0x213   :  { %2133 = vmatprep.subr.bf16.mxu0 %v3388_v14 }
 0x216   :  { %2134 = vmatpush1.bf16.msra.mxu0 %v3386_v15 }
 0x217   :  { %2135 = vmatprep.subr.bf16.mxu0 %v3391_v16 }
 0x21a   :  { %2136 = vmatpush1.bf16.msra.mxu0 %v3389_v19 }
 0x21b   :  { %2137 = vmatprep.subr.bf16.mxu0 %v3394_v21 }
 0x21e   :  { %2138 = vmatpush1.bf16.msra.mxu0 %v3392_v22  ;;  %v2875_v22 = vld [vmem:[%s3811_s10] ss:$0 sm:$0xff]  ;;  %s3528_s10 = scalar_lea.vmem %s2574_s9, 128 }
 0x21f   :  { %2139 = vmatprep.subr.bf16.mxu0 %v3397_v23  ;;  %p3529_p4 = scmp.ne.s32.totalorder %s2574_s9, %s3528_s10  ;;  %p3534_p6 = scmp.lt.s32.totalorder %s3528_s10, %s3528_s10 }
 0x221   :  { %p3535_p7 = por %p3534_p6, %p3533_p5 }
 0x222   :  { %2140 = vmatpush1.bf16.msra.mxu0 %v3395_v24 }
 0x223   :  { %2141 = vmatprep.subr.bf16.mxu0 %v3400_v25  ;;  %p3536_p8 = pnand %p3535_p7, %p3529_p4 }
 0x226   :  { %2142 = vmatpush1.bf16.msra.mxu0 %v3398_v26 }
 0x227   :  { %2143 = vmatprep.subr.bf16.mxu0 %v3403_v27 }
 0x22a   :  { %2144 = vmatpush1.bf16.msra.mxu0 %v3401_v28 }
 0x22d   :  { %2146 = vmatmul.mubr.bf16.vlgmr.msra.gmra.mrb[4].mxu0 %v1672_v63 }
 0x300   :  { %v2147_v38 = vpop.f32.mrb[4].mxu0 }
 0x301   :  { %v2970_v39 = vadd.f32 %v2147_v38, %v1743_v36  ;;  %v2149_v40 = vpop.f32.mrb[5].mxu0 }
 0x302   :  { %v2971_v41 = vadd.f32 %v2149_v40, %v1747_v37  ;;  %v2151_v42 = vpop.f32.mrb[6].mxu0 }
 0x303   :  { %v2972_v43 = vadd.f32 %v2151_v42, %v1743_v36  ;;  %v2153_v44 = vpop.f32.mrb[7].mxu0  ;;  %v2156_v0 = vmax.f32 %v2970_v39, 0.0 }
 0x304   :  { %v2973_v45 = vadd.f32 %v2153_v44, %v1747_v37  ;;  %v2157_v47 = vmax.f32 %v2971_v41, 0.0 }
 0x305   :  { %v2158_v46 = vmax.f32 %v2972_v43, 0.0 }
 0x306   :  { %v2159_v48 = vmax.f32 %v2973_v45, 0.0 }
 0x307   :  { %v2160_v49 = vpack.c.bf16 %v2158_v46, %v2156_v0 }
 0x308   :  { %v2161_v50 = vpack.c.bf16 %v2159_v48, %v2157_v47 }
 0x30a   :  { %2329 = vmatprep.mubr.bf16.mxu1 %v2161_v50 }
 0x30b   :  { %2330 = vmatmul.mubr.bf16.vlgmr.msra.gmra.mrb[8].mxu1 %v2160_v49 }
 0x30c   :  { %2927 = vmatpush3.bf16.msra.mxu1 %v3420_v18  ;;  %2942 = vmatprep.mubr.msk.bf16.mxu1 %vm3572_vm1, %v3571_v34 }
 0x30d   :  { %2928 = vmatprep.subr.bf16.mxu1 %v3571_v34 }
 0x310   :  { %2929 = vmatpush3.bf16.msra.mxu1 %v3421_v17 }
 0x311   :  { %2930 = vmatprep.subr.bf16.mxu1 %v3571_v34 }
 0x314   :  { %2931 = vmatpush3.bf16.msra.mxu1 %v3422_v20 }
 0x315   :  { %2932 = vmatprep.subr.bf16.mxu1 %v3571_v34 }
 0x318   :  { %2933 = vmatpush3.bf16.msra.mxu1 %v3423_v51 }
 0x319   :  { %2934 = vmatprep.subr.bf16.mxu1 %v3571_v34 }
 0x31c   :  { %2935 = vmatpush3.bf16.msra.mxu1 %v3424_v11 }
 0x31d   :  { %2936 = vmatprep.subr.bf16.mxu1 %v3571_v34 }
 0x320   :  { %2937 = vmatpush3.bf16.msra.mxu1 %v3425_v52 }
 0x321   :  { %2938 = vmatprep.subr.bf16.mxu1 %v3571_v34 }
 0x324   :  { %2939 = vmatpush3.bf16.msra.mxu1 %v3426_v53 }
 0x325   :  { %2940 = vmatprep.subr.bf16.mxu1 %v3571_v34 }
 0x328   :  { %2941 = vmatpush3.bf16.msra.mxu1 %v3427_v54 }
 0x329   :  { %2946 = vmatprep.subr.bf16.mxu1 %v3571_v34 }
 0x3de   :  { %v2906_v55 = vpop.f32.mrb[8].mxu1 }
 0x3df   :  { %v2907_v57 = vpop.f32.mrb[9].mxu1 }
 0x3e0   :  { %v2908_v58 = vadd.f32 %v2907_v57, %v2906_v55  ;;  %v2909_v59 = vpop.f32.mrb[10].mxu1 }
 0x3e1   :  { %v2910_v60 = vpop.f32.mrb[11].mxu1 }
 0x3e2   :  { %v2332_v61 = vadd.f32 %v2908_v58, %v2849_v56  ;;  %v2911_v62 = vadd.f32 %v2910_v60, %v2909_v59 }
 0x3e4   :  { %v2335_v63 = vadd.f32 %v2911_v62, %v2849_v56  ;;  %v2338_v1 = vmax.f32 %v2332_v61, 0.0 }
 0x3e6   :  { %v2339_v2 = vmax.f32 %v2335_v63, 0.0 }
 0x3e8   :  { %v2340_v4 = vpack.c.bf16 %v2339_v2, %v2338_v1 }
 0x3ea   :  { %2943 = vmatmul.mubr.bf16.vlgmr.msra.gmra.mrb[12].mxu1 %v2340_v4 }
 0x3eb   :  { %2947 = vmatpush3.bf16.msra.mxu1 %v3428_v3  ;;  %2954 = vmatprep.mubr.msk.bf16.mxu1 %vm3572_vm1, %v3571_v34 }
 0x3ec   :  { %2948 = vmatprep.subr.bf16.mxu1 %v3571_v34 }
 0x3ef   :  { %2949 = vmatpush3.bf16.msra.mxu1 %v3429_v5 }
 0x3f0   :  { %2950 = vmatprep.subr.bf16.mxu1 %v3571_v34 }
 0x3f3   :  { %2951 = vmatpush3.bf16.msra.mxu1 %v3430_v6 }
 0x3f4   :  { %2952 = vmatprep.subr.bf16.mxu1 %v3571_v34 }
 0x3f7   :  { %2953 = vmatpush3.bf16.msra.mxu1 %v3431_v7 }
 0x4bd   :  { %v2446_v9 = vpop.f32.mrb[12].mxu1 }
 0x4be   :  { %v2447_v10 = vadd.f32 %v2866_v8, %v2446_v9  ;;  %v2944_v12 = vpop.f32.mrb[13].mxu1 }
 0x4bf   :  { %v2449_v13 = vpop.f32.mrb[14].mxu1 }
 0x4c0   :  { %v2450_v14 = vadd.f32 %v2866_v8, %v2449_v13  ;;  %v2945_v15 = vpop.f32.mrb[15].mxu1  ;;  %v2453_v16 = vmax.f32 %v2447_v10, 0.0 }
 0x4c2   :  { %v2454_v19 = vmax.f32 %v2450_v14, 0.0 }
 0x4c4   :  { %v2455_v21 = vpack.c.bf16 %v2454_v19, %v2453_v16 }
 0x4c6   :  { %2955 = vmatmul.mubr.msk.bf16.vlgmr.msra.gmra.mrb[16].mxu1 %vm2495_vm2, %v2455_v21 }
 0x599   :  { %v2533_v23 = vpop.f32.mrb[16].mxu1 }
 0x59a   :  { %v2534_v24 = vadd.f32 %v2875_v22, %v2533_v23  ;;  %v2956_v25 = vpop.f32.mrb[17].mxu1 }
 0x59b   :  { %v2536_v26 = vpop.f32.mrb[18].mxu1 }
 0x59c   :  { %2540 = vmax.xlane.f32.xlu0 %v2534_v24  ;;  %v2957_v27 = vpop.f32.mrb[19].mxu1  ;;  %v2537_v28 = vadd.f32 %v2875_v22, %v2536_v26 }
 0x5a0   :  { %2542 = vmax.xlane.f32.xlu0 %v2537_v28 }
 0x629   :  { %v2541_v29 = vpop.xlane.xlu0 %2540 }
 0x62a   :  { %v2544_v30 = vsub.f32 %v2534_v24, %v2541_v29 }
 0x62c   :  { %v2546_v31 = vmul.f32 1.442695, %v2544_v30 }
 0x62d   :  { %v2543_v32 = vpop.xlane.xlu0 %2542 }
 0x62e   :  { %3432 = vpow2.f32 %v2546_v31  ;;  %v2545_v33 = vsub.f32 %v2537_v28, %v2543_v32 }
 0x630   :  { %v2548_v34 = vmul.f32 1.442695, %v2545_v33 }
 0x632   :  { %3434 = vpow2.f32 %v2548_v34 }
 0x638   :  { %v3433_v35 = vpop.eup %3432 }
 0x639   :  { %2550 = vadd.xlane.f32.xlu1 %v3433_v35 }
 0x63c   :  { %v3435_v36 = vpop.eup %3434 }
 0x63d   :  { %2552 = vadd.xlane.f32.xlu1 %v3435_v36 }
 0x6c6   :  { %v2551_v37 = vpop.xlane.xlu1 %2550 }
 0x6c7   :  { %3436 = vrcp.f32 %v2551_v37 }
 0x6ca   :  { %v2553_v38 = vpop.xlane.xlu1 %2552 }
 0x6cb   :  { %3438 = vrcp.f32 %v2553_v38 }
 0x6d1   :  { %v3437_v39 = vpop.eup %3436 }
 0x6d2   :  { %v2556_v41 = vmul.f32 %v3437_v39, %v3433_v35 }
 0x6d5   :  { %v3439_v40 = vpop.eup %3438 }
 0x6d6   :  { %v2557_v42 = vmul.f32 %v3439_v40, %v3435_v36 }
 0x6d8   :  { %v2888_v43 = vpack.c.bf16 %v2557_v42, %v2556_v41 }
 0x6da   :  { %2889 = vst [vmem:[#allocation10] sm:$0xff] %v2888_v43  }
 0x6db   :  { %3539 = shalt.err (!%p3536_p8)
}
 0x6dc   :  { %s3540_s20 = scalar_lea.hbm %s3812_s11, 128 }
 0x6dd   :  { %p3541_p9 = scmp.ne.s32.totalorder %s3812_s11, %s3540_s20  ;;  %p3544_p10 = scmp.lt.u32.totalorder %s3540_s20, %s3812_s11 }
 0x6df   :  { %p3546_p11 = pnand %p3544_p10, %p3541_p9 }
 0x6e1   :  { %3549 = shalt.err (!%p3546_p11)
}
 0x6e2   :  { %2579 = dma.vmem_to_hbm [thread:$0]  %s2574_s9, 128, %s3812_s11, [#allocation4], %s3568_s3, %s3568_s3, %s3569_s26  }
 0x6e3   :  { %3556 = dma.done.wait [#allocation4], 128  }
 0x6e4   :  { %3557 = vsyncadd [#allocation4], 4294967168 }
 0x6e5   :  { %2583 = vsyncpa [#allocation3], 1 }
 0x6e6   :  { %2584 = vsyncpa [#allocation6], 1 }
 0x6e7   :  { %2585 = vsyncpa [#allocation9], 1 }
 0x6e8   :  { %2586 = vsyncpa [#allocation4], 1 }

</bundles_post_ra>
